<compile_context>
chip_gen: v7x
topology: tpu7x:2x2x1
jax: 0.10.0
libtpu: 0.0.40
codegen_flags: <defaults>
</compile_context>

<pallas_src>
import numpy as np
import jax
import jax.numpy as jnp
from jax.experimental import pallas as pl
from jax.experimental.pallas import tpu as pltpu

M, K, N = 1, 2048, 1000
N_PAD = 1024          # lane-dense column count (multiple of 128)
TN = 512              # N tile: 2 tiles -> one per TensorCore on v7x ("parallel" axis)

# Deterministic stand-ins for the torch.randint thresholds.
# TODO(synk): the PyTorch module re-draws k1/k2/k3/k5/k7 every forward; we freeze them for
# reproducibility, so outputs won't match the module's stochastic behavior.
_rng = np.random.RandomState(0)
K1 = float(_rng.randint(-7, 7))      # clamp_min
K2 = float(_rng.randint(-128, 128))  # clamp_max
K3 = float(_rng.randint(-128, 128))  # clamp_min
K5 = float(_rng.randint(-128, 128))  # clamp_min
K7 = float(_rng.randint(-128, 128))  # clamp_min
# TODO(synk): torch.relu6(v, k) with a second arg is invalid PyTorch; relu6 is implemented
# as clip(v, 0, 6) and the spurious k4/k6/k8 arguments are ignored.


def _clamp_chain(v):
    """The original op chain (numpy); used to fold bounds and for the reference check."""
    v = np.maximum(v, K1)
    v = np.minimum(v, K2)
    v = np.maximum(v, K3)
    v = np.clip(v, 0.0, 6.0)
    v = np.maximum(v, K5)
    v = np.clip(v, 0.0, 6.0)
    v = np.maximum(v, K7)
    v = np.clip(v, 0.0, 6.0)
    return v


# A composition of clamps folds exactly to clip(v, f(-inf), f(+inf)).
CLAMP_LO = float(_clamp_chain(-np.inf))
CLAMP_HI = float(_clamp_chain(np.inf))


def model_kernel(x1_ref, w_ref, b_ref, x2s_ref, x4_ref, o_ref):
    # Full-K GEMV tile: bf16 x bf16 -> f32 on the MXU, single pass per N tile.
    acc = jnp.dot(x1_ref[...], w_ref[...], preferred_element_type=jnp.float32)
    v = jnp.clip(acc + b_ref[...], CLAMP_LO, CLAMP_HI)   # folded clamp/relu6 chain
    o_ref[...] = v * x2s_ref[...] + x4_ref[...]          # x3 already folded into x2s


def prepare_params(w, b):
    """One-time weight prep (hoisted out of the hot path): pad N->N_PAD, cast W to bf16."""
    pad = N_PAD - N
    w_p = jnp.pad(w, ((0, 0), (0, pad))).astype(jnp.bfloat16)
    b_p = jnp.pad(b, ((0, 0), (0, pad)))
    return w_p, b_p


_COST = pl.CostEstimate(
    flops=2 * M * K * N_PAD,
    transcendentals=0,
    bytes_accessed=K * N_PAD * 2 + M * K * 2 + 4 * M * N_PAD * 4,
)


@jax.jit
def model_forward(x1, w_p, b_p, x2, x3, x4):
    pad = N_PAD - N
    x1_b = x1.astype(jnp.bfloat16)
    x2s_p = jnp.pad(x3[0] * x2, ((0, 0), (0, pad)))   # fold scalar x3 into x2
    x4_p = jnp.pad(x4, ((0, 0), (0, pad)))

    out = pl.pallas_call(
        model_kernel,
        out_shape=jax.ShapeDtypeStruct((M, N_PAD), jnp.float32),
        grid=(N_PAD // TN,),
        in_specs=[
            pl.BlockSpec((M, K), lambda i: (0, 0)),     # x1   (bf16, full K)
            pl.BlockSpec((K, TN), lambda i: (0, i)),    # W    (bf16, full K x TN)
            pl.BlockSpec((1, TN), lambda i: (0, i)),    # bias (f32)
            pl.BlockSpec((M, TN), lambda i: (0, i)),    # x3*x2
            pl.BlockSpec((M, TN), lambda i: (0, i)),    # x4
        ],
        out_specs=pl.BlockSpec((M, TN), lambda i: (0, i)),
        compiler_params=pltpu.CompilerParams(
            dimension_semantics=("parallel",),
            vmem_limit_bytes=16 << 20),
        cost_estimate=_COST,
    )(x1_b, w_p, b_p, x2s_p, x4_p)
    return out[:, :N]


if __name__ == "__main__":
    key = jax.random.PRNGKey(0)
    kx1, kx2, kx3, kx4, kw, kb = jax.random.split(key, 6)

    # Inputs matching the PyTorch module shapes.
    x1 = jax.random.normal(kx1, (M, K), dtype=jnp.float32)
    x2 = jax.random.normal(kx2, (M, N), dtype=jnp.float32)
    x3 = jax.random.normal(kx3, (1,), dtype=jnp.float32)
    x4 = jax.random.normal(kx4, (M, N), dtype=jnp.float32)

    # Deterministic Linear(2048, 1000) parameters.
    bound = 1.0 / np.sqrt(K)
    w = jax.random.uniform(kw, (K, N), minval=-bound, maxval=bound,
                           dtype=jnp.float32)          # stored as (K, N) = W^T
    b = jax.random.uniform(kb, (1, N), minval=-bound, maxval=bound,
                           dtype=jnp.float32)

    # One-time weight preparation (not in the per-call path).
    w_p, b_p = prepare_params(w, b)
    jax.block_until_ready((w_p, b_p))

    out = model_forward(x1, w_p, b_p, x2, x3, x4)
    jax.block_until_ready(out)

    # Reference: same bf16-quantized matmul operands (f32 accumulate), full original op chain.
    x1_q = x1.astype(jnp.bfloat16).astype(jnp.float32)
    w_q = w.astype(jnp.bfloat16).astype(jnp.float32)
    v1 = x1_q @ w_q + b
    v = jnp.maximum(v1, K1)
    v = jnp.minimum(v, K2)
    v = jnp.maximum(v, K3)
    v = jnp.clip(v, 0.0, 6.0)
    v = jnp.maximum(v, K5)
    v = jnp.clip(v, 0.0, 6.0)
    v = jnp.maximum(v, K7)
    v = jnp.clip(v, 0.0, 6.0)
    ref = x3[0] * (v * x2) + x4
    np.testing.assert_allclose(np.asarray(out), np.asarray(ref),
                               rtol=2e-3, atol=2e-3)

    print("KERNEL_OK")
</pallas_src>

<mosaic_0001>
module attributes {stable_mosaic.version = 11 : i64} {
  func.func @model_kernel(%arg0: i32, %arg1: memref<1x2048xbf16, #tpu.memory_space<vmem>>, %arg2: memref<2048x512xbf16, #tpu.memory_space<vmem>>, %arg3: memref<1x512xf32, #tpu.memory_space<vmem>>, %arg4: memref<1x512xf32, #tpu.memory_space<vmem>>, %arg5: memref<1x512xf32, #tpu.memory_space<vmem>>, %arg6: memref<1x512xf32, #tpu.memory_space<vmem>>) attributes {dimension_semantics = [#tpu.dimension_semantics<parallel>], iteration_bounds = array<i64: 2>, scalar_prefetch = 0 : i64, scratch_operands = 0 : i64, tpu.core_type = #tpu.core_type<tc>, window_params = [{pipeline_mode = #tpu.pipeline_mode<synchronous>, transform_indices = @transform_0, window_bounds = array<i64: 1, 2048>}, {transform_indices = @transform_1, window_bounds = array<i64: 2048, 512>}, {transform_indices = @transform_2, window_bounds = array<i64: 1, 512>}, {transform_indices = @transform_3, window_bounds = array<i64: 1, 512>}, {transform_indices = @transform_4, window_bounds = array<i64: 1, 512>}, {transform_indices = @transform_5, window_bounds = array<i64: 1, 512>}]} {
    %c0 = arith.constant 0 : index
    %c0_0 = arith.constant 0 : index
    %0 = vector.load %arg1[%c0, %c0_0] : memref<1x2048xbf16, #tpu.memory_space<vmem>>, vector<1x2048xbf16>
    %c0_1 = arith.constant 0 : index
    %c0_2 = arith.constant 0 : index
    %1 = vector.load %arg2[%c0_1, %c0_2] : memref<2048x512xbf16, #tpu.memory_space<vmem>>, vector<2048x512xbf16>
    %cst = arith.constant dense<0.000000e+00> : vector<1x512xf32>
    %2 = tpu.matmul %0, %1, %cst {dimension_numbers = #tpu.dot_dimension_numbers<[1], [0], [0], [1], [0, 0, 1, 1], [], []>} : vector<1x2048xbf16>, vector<2048x512xbf16>, vector<1x512xf32> -> vector<1x512xf32>
    %c0_3 = arith.constant 0 : index
    %c0_4 = arith.constant 0 : index
    %3 = vector.load %arg3[%c0_3, %c0_4] : memref<1x512xf32, #tpu.memory_space<vmem>>, vector<1x512xf32>
    %4 = arith.addf %2, %3 : vector<1x512xf32>
    %cst_5 = arith.constant 6.000000e+00 : f32
    %cst_6 = arith.constant 6.000000e+00 : f32
    %5 = vector.broadcast %cst_5 : f32 to vector<1x512xf32>
    %6 = arith.maximumf %5, %4 : vector<1x512xf32>
    %7 = vector.broadcast %cst_6 : f32 to vector<1x512xf32>
    %8 = arith.minimumf %7, %6 : vector<1x512xf32>
    %c0_7 = arith.constant 0 : index
    %c0_8 = arith.constant 0 : index
    %9 = vector.load %arg4[%c0_7, %c0_8] : memref<1x512xf32, #tpu.memory_space<vmem>>, vector<1x512xf32>
    %10 = arith.mulf %8, %9 : vector<1x512xf32>
    %c0_9 = arith.constant 0 : index
    %c0_10 = arith.constant 0 : index
    %11 = vector.load %arg5[%c0_9, %c0_10] : memref<1x512xf32, #tpu.memory_space<vmem>>, vector<1x512xf32>
    %12 = arith.addf %10, %11 : vector<1x512xf32>
    %c0_11 = arith.constant 0 : index
    %c0_12 = arith.constant 0 : index
    %13 = vector.load %arg6[%c0_11, %c0_12] : memref<1x512xf32, #tpu.memory_space<vmem>>, vector<1x512xf32>
    tpu.vector_store %arg6[%c0_11, %c0_12], %12 {strides = array<i32>} : memref<1x512xf32, #tpu.memory_space<vmem>>, vector<1x512xf32>,
    return
  }
  func.func @transform_0(%arg0: i32) -> (i32, i32) {
    %c0_i32 = arith.constant 0 : i32
    %c0_i32_0 = arith.constant 0 : i32
    %c0_i32_1 = arith.constant 0 : i32
    return %c0_i32, %c0_i32_0 : i32, i32
  }
  func.func @transform_1(%arg0: i32) -> (i32, i32) {
    %c0_i32 = arith.constant 0 : i32
    %c0_i32_0 = arith.constant 0 : i32
    return %c0_i32, %arg0 : i32, i32
  }
  func.func @transform_2(%arg0: i32) -> (i32, i32) {
    %c0_i32 = arith.constant 0 : i32
    %c0_i32_0 = arith.constant 0 : i32
    return %c0_i32, %arg0 : i32, i32
  }
  func.func @transform_3(%arg0: i32) -> (i32, i32) {
    %c0_i32 = arith.constant 0 : i32
    %c0_i32_0 = arith.constant 0 : i32
    return %c0_i32, %arg0 : i32, i32
  }
  func.func @transform_4(%arg0: i32) -> (i32, i32) {
    %c0_i32 = arith.constant 0 : i32
    %c0_i32_0 = arith.constant 0 : i32
    return %c0_i32, %arg0 : i32, i32
  }
  func.func @transform_5(%arg0: i32) -> (i32, i32) {
    %c0_i32 = arith.constant 0 : i32
    %c0_i32_0 = arith.constant 0 : i32
    return %c0_i32, %arg0 : i32, i32
  }
}

</mosaic_0001>

<bundles_post_ra>
// kernel: model_forward.1
= control target key start
LH: loop header
LB: loop body
LE: loop exit
PB: predicated region body
PF: predicated region fallthrough
CT: control target
= control target key end

     0   :  { %s6830_s0 = inlined_call_operand.vmem [shape: bf16[1,2048], index: 0, kind: input, shape index: {}]   ;;  %s6831_s1 = inlined_call_operand.hbm [shape: bf16[2048,1024], index: 1, kind: input, shape index: {}]   ;;  %s6832_s2 = inlined_call_operand.hbm [shape: f32[1,1024], index: 2, kind: input, shape index: {}]   ;;  %s6833_s3 = inlined_call_operand.vmem [shape: f32[1,1024], index: 3, kind: input, shape index: {}]   ;;  %s6834_s4 = inlined_call_operand.vmem [shape: f32[1,1024], index: 4, kind: input, shape index: {}]   ;;  %s6835_s5 = inlined_call_operand.hbm [shape: f32[1,1024], index: 5, kind: output, shape index: {}]  }
   0x1   :  { %6838 = sst [smem:[#allocation11_spill]] %s6831_s1 }
   0x2   :  { %10 = vsyncpa [#allocation3], 0 }
   0x3   :  { %12 = vsyncpa [#allocation3 + $0x1], 0 }
   0x4   :  { %13 = vsyncpa [#allocation6], 0 }
   0x5   :  { %15 = vsyncpa [#allocation6 + $0x1], 0 }
   0x6   :  { %16 = vsyncpa [#allocation4], 0 }
   0x7   :  { %18 = vsyncpa [#allocation4 + $0x1], 0  ;;  %s5999_s18 = smov 0   ;;  %s6001_s19 = smov 0  }
   0x8   :  { %s6003_s20 = smov 0   ;;  %s6005_s21 = smov 0  }
   0x9 LB: > { %s6020_s22 = sadd.s32 4294967295, %s5960_s21   ;;  %s4410_s23 = sadd.s32 4294967294, %s5960_s21   ;;  %s5960_s21 = sphi %s6005_s21, %s6855_s21   ;;  %s5956_s20 = sphi %s6003_s20, %s6854_s20   ;;  %s5952_s19 = sphi %s6001_s19, %s6853_s19   ;;  %s5948_s18 = sphi %s5999_s18, %s6852_s18  }
   0xa   : > { %s6024_s24 = sadd.s32 1, %s5960_s21   ;;  %s52_s25 = sadd.s32 1, %s5956_s20 }
   0xb   : > { %s49_s26 = ssub.s32 %s5960_s21, %s6024_s24  ;;  %p59_p0 = scmp.ne.s32.totalorder %s5956_s20, %s5952_s19 }
   0xc   : > { %p50_p1 = scmp.eq.s32.totalorder %s49_s26, 0  ;;  %p60_p2 = scmp.eq.s32.totalorder %s5960_s21, 0 }
   0xd   : > { %p65_p3 = scmp.ne.s32.totalorder %s5952_s19, %s5948_s18  ;;  %p66_p4 = scmp.eq.s32.totalorder %s6020_s22, 0 }
   0xe   : > { %s6036_s27 = scalar_select %p50_p1, %s5956_s20, %s52_s25  }
   0xf   : > { %p6038_p5 = por %p60_p2, %p59_p0  ;;  %p6042_p6 = por %p66_p4, %p65_p3 }
  0x10   : > { %p167_p7 = scmp.eq.s32.totalorder %s6020_s22, 1  ;;  %p173_p8 = scmp.eq.s32.totalorder %s4410_s23, 1 }
  0x11   : > { %s6840_s29 = scalar_select %p6042_p6, 1, 0 }
  0x12   : > { %p5022_p10 = scmp.lt.s32.totalorder %s5960_s21, 2  ;;  %p6049_p11 = por %p167_p7, %p59_p0 }
  0x13   : > { %p6053_p12 = por %p173_p8, %p65_p3  ;;  %s6058_s7 = sand.u32 1, %s5956_s20  }
  0x14   : > { %s6841_s30 = scalar_select %p6049_p11, 1, 0 }
  0x15   : > { %s6842_s6 = scalar_select %p6053_p12, 1, 0 }
  0x16   : > { %s4942_s8 = sshll.u32 %s5960_s21, 8  ;;  %s4413_s9 = sshll.u32 %s6058_s7, 12 }
  0x17   : > { %s6843_s1 = sld [smem:[#allocation11_spill]]  ;;  %s200_s13 = scalar_lea.vmem [#allocation2], %s4413_s9 }
  0x18   : > { %s207_s14 = sshll.u32 %s200_s13, 4  ;;  %p6069_p13 = pnand %p5022_p10, %p6038_p5  ;;  %s6073_s14 = int_to_ptr.vmem [resolvable:$true] %s207_s14 }
  0x19   : > { %s197_s16 = scalar_lea.sflag [#allocation3], %s6058_s7 }
  0x1a   : > { %p5832_p2 = pneg %p6069_p13 }
  0x1d   : > { %s6065_s12 = scalar_lea.hbm %s6843_s1, %s4942_s8  ;;  %s5835_s26 = scalar_lea.hbm %s6843_s1, 131072 }
  0x1e   : > { %s5830_s17 = scalar_lea.hbm %s6065_s12, 65536  ;;  %p5836_p5 = scmp.lt.u32.totalorder %s6065_s12, %s6843_s1 }
  0x1f   : > { %p5831_p1 = scmp.ne.s32.totalorder %s6065_s12, %s5830_s17  ;;  %p5837_p7 = scmp.lt.u32.totalorder %s5835_s26, %s5830_s17 }
  0x20   : > { %p5839_p10 = scmp.lt.u32.totalorder %s5830_s17, %s6065_s12 }
  0x21   : > { %p5833_p3 = pnand %p5832_p2, %p5831_p1  ;;  %p5838_p8 = por %p5837_p7, %p5836_p5 }
  0x23   : > { %p5834_p4 = pneg %p5833_p3  ;;  %p5840_p9 = por %p5839_p10, %p5838_p8 }
  0x25   : > { %p5841_p0 = pnand %p5840_p9, %p5834_p4 }
  0x27   : > { %5844 = shalt.err (!%p5841_p0)
}
  0x28   : > { %s5845_s9 = scalar_lea.vmem %s6073_s14, 65536  ;;  %s5962_s10 = smov [#allocation2]  }
  0x29   : > { %p5846_p1 = scmp.ne.s32.totalorder %s6073_s14, %s5845_s9  ;;  %s5850_s11 = sshll.u32 %s5962_s10, 4  ;;  %s5851_s11 = int_to_ptr.vmem [resolvable:$false] %s5850_s11 }
  0x2a   : > { %s5852_s13 = scalar_lea.vmem %s5851_s11, 131072  ;;  %p5853_p11 = scmp.lt.s32.totalorder %s6073_s14, %s5851_s11 }
  0x2b   : > { %p5848_p3 = pnand %p5846_p1, %p5832_p2  ;;  %p5854_p5 = scmp.lt.s32.totalorder %s5852_s13, %s5845_s9 }
  0x2d   : > { %p5849_p12 = pneg %p5848_p3  ;;  %p5855_p7 = por %p5854_p5, %p5853_p11 }
  0x2f   : > { %p5856_p8 = pnand %p5855_p7, %p5849_p12 }
  0x31   : > { %5859 = shalt.err (!%p5856_p8)
}
  0x32   : > { %s5963_s17 = smov 512   ;;  %s5964_s23 = smov 256  }
  0x33   : > { %s5965_s25 = smov 16   ;;  %p250_p9 = scmp.lt.s32.totalorder %s5960_s21, 3 }
  0x34   : > { %5014 = dma.hbm_to_vmem [thread:$0]  (!%p6069_p13), %s6065_s12, 65536, %s6073_s14, %s197_s16, %s5963_s17, %s5964_s23, %s5965_s25  }
  0x35   : > { %s4416_s26 = sshll.u32 %s6058_s7, 2  ;;  %s4943_s28 = sshll.u32 %s5960_s21, 6 }
  0x36   : > { %p6845_p11 = scmp.ge.s32.totalorder %s5960_s21, 1  ;;  %s6116_s11 = scalar_lea.hbm %s6832_s2, %s4943_s28 }
  0x37   : > { %s221_s13 = scalar_lea.vmem [#allocation5], %s4416_s26  ;;  %s218_s12 = scalar_lea.sflag [#allocation6], %s6058_s7 }
  0x38   : > { %p6109_p12 = pnand %p6845_p11, %p250_p9  ;;  %s229_s1 = sshll.u32 %s221_s13, 4  ;;  %s230_s1 = int_to_ptr.vmem [resolvable:$true] %s229_s1 }
  0x39   : > { %s5860_s14 = scalar_lea.hbm %s6116_s11, 64  ;;  %s5865_s23 = scalar_lea.hbm %s6832_s2, 128 }
  0x3a   : > { %s6846_s8 = scalar_select %p6109_p12, 1, 0 }
  0x3b   : > { %p5861_p0 = scmp.ne.s32.totalorder %s6116_s11, %s5860_s14  ;;  %p5866_p1 = scmp.lt.u32.totalorder %s6116_s11, %s6832_s2 }
  0x3c   : > { %p5867_p3 = scmp.lt.u32.totalorder %s5865_s23, %s5860_s14  ;;  %p5869_p7 = scmp.lt.u32.totalorder %s5860_s14, %s6116_s11 }
  0x3d   : > { %p5863_p4 = pnand %p5861_p0, %p5832_p2 }
  0x3e   : > { %p5868_p5 = por %p5867_p3, %p5866_p1 }
  0x3f   : > { %p5864_p10 = pneg %p5863_p4 }
  0x40   : > { %p5870_p8 = por %p5869_p7, %p5868_p5 }
  0x42   : > { %p5871_p9 = pnand %p5870_p8, %p5864_p10 }
  0x44   : > { %5874 = shalt.err (!%p5871_p9)
}
  0x45   : > { %s5875_s7 = scalar_lea.vmem %s230_s1, 64  ;;  %s5966_s26 = smov [#allocation5]  }
  0x46   : > { %p5876_p11 = scmp.ne.s32.totalorder %s230_s1, %s5875_s7  ;;  %s5880_s9 = sshll.u32 %s5966_s26, 4  ;;  %s5881_s9 = int_to_ptr.vmem [resolvable:$false] %s5880_s9 }
  0x47   : > { %s5882_s10 = scalar_lea.vmem %s5881_s9, 128  ;;  %p5883_p6 = scmp.lt.s32.totalorder %s230_s1, %s5881_s9 }
  0x48   : > { %p5878_p0 = pnand %p5876_p11, %p5832_p2  ;;  %p5884_p12 = scmp.lt.s32.totalorder %s5882_s10, %s5875_s7 }
  0x4a   : > { %p5879_p4 = pneg %p5878_p0  ;;  %p5885_p1 = por %p5884_p12, %p5883_p6 }
  0x4c   : > { %p5886_p3 = pnand %p5885_p1, %p5879_p4 }
  0x4e   : > { %5889 = shalt.err (!%p5886_p3)
}
  0x4f   : > { %5017 = dma.hbm_to_vmem [thread:$0]  (!%p6069_p13), %s6116_s11, 64, %s230_s1, %s218_s12  }
  0x50   : > { %p6847_p10 = scmp.ne.s32.totalorder %s6846_s8, 0 }
  0x51   : > { %s6141_s13 = sand.u32 (!%p6847_p10), 1, %s5952_s19   ;;  %p6848_p6 = scmp.ne.s32.totalorder (!%p6847_p10), %s6840_s29, 0 }
  0x52   : > { %254 = sbr.rel (%p6847_p10) target bundleno = 851 (0x353), region = 40  ;;  %s4420_s14 = sshll.u32 (!%p6847_p10), %s6141_s13, 12 }
  0x53   : > { %s257_s16 = scalar_lea.sflag (!%p6847_p10), [#allocation3], %s6141_s13  ;;  %s6145_s17 = scalar_lea.vmem (!%p6847_p10), [#allocation2], %s4420_s14 }
  0x59   : > { %5935 = dma.done.wait (%p6848_p6), %s257_s16, 65536  }
  0x5a   : > { %5937 = vsyncadd (%p6848_p6), %s257_s16, 4294901760  ;;  %s4421_s1 = sshll.u32 %s6141_s13, 2  ;;  %s266_s15 = scalar_lea.sflag [#allocation6], %s6141_s13 }
  0x5b   : > { %s6155_s8 = scalar_lea.vmem [#allocation5], %s4421_s1 }
  0x5c   : > { %5939 = dma.done.wait (%p6848_p6), %s266_s15, 64  }
  0x5d   : > { %5941 = vsyncadd (%p6848_p6), %s266_s15, 4294967232  ;;  %v5060_v0 = vld [vmem:[%s6145_s17 + $0x4] ss:$16 sps:$4 sm:$0xff]   ;;  %v5062_v1 = vld [vmem:[%s6145_s17 + $0xc] ss:$16 sps:$4 sm:$0xff]   ;;  %v843_v38 = vlaneseq  ;;  %s4423_s25 = sshll.u32 %s6020_s22, 2 }
  0x5e   : > { %3534 = vmatprep.subr.bf16.mxu0 %v5060_v0  ;;  %v5064_v2 = vld [vmem:[%s6145_s17] ss:$16 sps:$4 sm:$0xff]   ;;  %v5065_v3 = vld [vmem:[%s6145_s17 + $0x8] ss:$16 sps:$4 sm:$0xff]   ;;  %3862 = vmatprep.subr.bf16.mxu1 %v5062_v1  ;;  %v5066_v4 = vld [vmem:[%s6145_s17 + $0x24] ss:$16 sps:$4 sm:$0xff]  }
  0x5f   : > { %3535 = vmatpush1.bf16.msra.mxu0 %v5064_v2  ;;  %3863 = vmatpush1.bf16.msra.mxu1 %v5065_v3  ;;  %v5068_v5 = vld [vmem:[%s6145_s17 + $0x2c] ss:$16 sps:$4 sm:$0xff]   ;;  %v5070_v6 = vld [vmem:[%s6145_s17 + $0x20] ss:$16 sps:$4 sm:$0xff]   ;;  %v5071_v7 = vld [vmem:[%s6145_s17 + $0x28] ss:$16 sps:$4 sm:$0xff]  }
  0x60   : > { %3536 = vmatprep.subr.bf16.mxu0 %v5066_v4  ;;  %3864 = vmatprep.subr.bf16.mxu1 %v5068_v5  ;;  %v5072_v8 = vld [vmem:[%s6145_s17 + $0x44] ss:$16 sps:$4 sm:$0xff]   ;;  %v5074_v9 = vld [vmem:[%s6145_s17 + $0x4c] ss:$16 sps:$4 sm:$0xff]   ;;  %v5076_v10 = vld [vmem:[%s6145_s17 + $0x40] ss:$16 sps:$4 sm:$0xff]  }
  0x61   : > { %v5077_v11 = vld [vmem:[%s6145_s17 + $0x48] ss:$16 sps:$4 sm:$0xff]   ;;  %v5078_v12 = vld [vmem:[%s6145_s17 + $0x64] ss:$16 sps:$4 sm:$0xff]   ;;  %v5080_v13 = vld [vmem:[%s6145_s17 + $0x6c] ss:$16 sps:$4 sm:$0xff]  }
  0x62   : > { %v5082_v14 = vld [vmem:[%s6145_s17 + $0x60] ss:$16 sps:$4 sm:$0xff]   ;;  %v5083_v15 = vld [vmem:[%s6145_s17 + $0x68] ss:$16 sps:$4 sm:$0xff]   ;;  %v5084_v16 = vld [vmem:[%s6145_s17 + $0x84] ss:$16 sps:$4 sm:$0xff]  }
  0x63   : > { %3537 = vmatpush1.bf16.msra.mxu0 %v5070_v6  ;;  %3865 = vmatpush1.bf16.msra.mxu1 %v5071_v7  ;;  %v5086_v17 = vld [vmem:[%s6145_s17 + $0x8c] ss:$16 sps:$4 sm:$0xff]   ;;  %v5088_v18 = vld [vmem:[%s6145_s17 + $0x80] ss:$16 sps:$4 sm:$0xff]   ;;  %v5089_v19 = vld [vmem:[%s6145_s17 + $0x88] ss:$16 sps:$4 sm:$0xff]  }
  0x64   : > { %3538 = vmatprep.subr.bf16.mxu0 %v5072_v8  ;;  %3866 = vmatprep.subr.bf16.mxu1 %v5074_v9  ;;  %v5090_v20 = vld [vmem:[%s6145_s17 + $0xa4] ss:$16 sps:$4 sm:$0xff]   ;;  %v5092_v21 = vld [vmem:[%s6145_s17 + $0xac] ss:$16 sps:$4 sm:$0xff]   ;;  %v5094_v22 = vld [vmem:[%s6145_s17 + $0xa0] ss:$16 sps:$4 sm:$0xff]  }
  0x65   : > { %v5095_v23 = vld [vmem:[%s6145_s17 + $0xa8] ss:$16 sps:$4 sm:$0xff]   ;;  %v5096_v24 = vld [vmem:[%s6145_s17 + $0xc4] ss:$16 sps:$4 sm:$0xff]   ;;  %v5098_v25 = vld [vmem:[%s6145_s17 + $0xcc] ss:$16 sps:$4 sm:$0xff]  }
  0x66   : > { %v5100_v26 = vld [vmem:[%s6145_s17 + $0xc0] ss:$16 sps:$4 sm:$0xff]   ;;  %v5101_v27 = vld [vmem:[%s6145_s17 + $0xc8] ss:$16 sps:$4 sm:$0xff]   ;;  %v5102_v28 = vld [vmem:[%s6145_s17 + $0xe4] ss:$16 sps:$4 sm:$0xff]  }
  0x67   : > { %3539 = vmatpush1.bf16.msra.mxu0 %v5076_v10  ;;  %3867 = vmatpush1.bf16.msra.mxu1 %v5077_v11  ;;  %v5104_v29 = vld [vmem:[%s6145_s17 + $0xec] ss:$16 sps:$4 sm:$0xff]   ;;  %v5106_v30 = vld [vmem:[%s6145_s17 + $0xe0] ss:$16 sps:$4 sm:$0xff]   ;;  %v5107_v31 = vld [vmem:[%s6145_s17 + $0xe8] ss:$16 sps:$4 sm:$0xff]  }
  0x68   : > { %3540 = vmatprep.subr.bf16.mxu0 %v5078_v12  ;;  %3868 = vmatprep.subr.bf16.mxu1 %v5080_v13  ;;  %v5108_v32 = vld [vmem:[%s6145_s17 + $0x104] ss:$16 sps:$4 sm:$0xff]   ;;  %v5110_v33 = vld [vmem:[%s6145_s17 + $0x10c] ss:$16 sps:$4 sm:$0xff]   ;;  %v5112_v34 = vld [vmem:[%s6145_s17 + $0x100] ss:$16 sps:$4 sm:$0xff]  }
  0x69   : > { %v5113_v35 = vld [vmem:[%s6145_s17 + $0x108] ss:$16 sps:$4 sm:$0xff]   ;;  %v5967_v36 = vmov 1966171168   ;;  %v5114_v39 = vld [vmem:[%s6145_s17 + $0x124] ss:$16 sps:$4 sm:$0xff]  }
  0x6a   : > { %v841_v37 = vunpack.c.l.s4 %v5967_v36  ;;  %v5116_v40 = vld [vmem:[%s6145_s17 + $0x12c] ss:$16 sps:$4 sm:$0xff]   ;;  %v5118_v41 = vld [vmem:[%s6145_s17 + $0x120] ss:$16 sps:$4 sm:$0xff]   ;;  %v6201_v43 = vshrl.u32 %v843_v38, 7  ;;  %p312_p13 = scmp.lt.s32.totalorder %s4423_s25, 7 }
  0x6b   : > { %3541 = vmatpush1.bf16.msra.mxu0 %v5082_v14  ;;  %3869 = vmatpush1.bf16.msra.mxu1 %v5083_v15  ;;  %v5119_v44 = vld [vmem:[%s6145_s17 + $0x128] ss:$16 sps:$4 sm:$0xff]   ;;  %v5120_v45 = vld [vmem:[%s6145_s17 + $0x144] ss:$16 sps:$4 sm:$0xff]   ;;  %v5122_v46 = vld [vmem:[%s6145_s17 + $0x14c] ss:$16 sps:$4 sm:$0xff]  }
  0x6c   : > { %3542 = vmatprep.subr.bf16.mxu0 %v5084_v16  ;;  %3870 = vmatprep.subr.bf16.mxu1 %v5086_v17  ;;  %v842_v42 = vunpack.c.0.s8 %v841_v37  ;;  %v5124_v47 = vld [vmem:[%s6145_s17 + $0x140] ss:$16 sps:$4 sm:$0xff]   ;;  %v5125_v48 = vld [vmem:[%s6145_s17 + $0x148] ss:$16 sps:$4 sm:$0xff]   ;;  %v5126_v50 = vld [vmem:[%s6145_s17 + $0x164] ss:$16 sps:$4 sm:$0xff]  }
  0x6d   : > { %v5128_v51 = vld [vmem:[%s6145_s17 + $0x16c] ss:$16 sps:$4 sm:$0xff]   ;;  %v6216_v52 = vld [vmem:[%s6830_s0] sm:$0xff]  ;;  %v5131_v55 = vld [vmem:[%s6145_s17 + $0x168] ss:$16 sps:$4 sm:$0xff]   ;;  %s6857_s25 = smov (!%p312_p13, %s4423_s25), 7 }
  0x6e   : > { %v6209_v49 = vsub.s32 %v842_v42, %v6201_v43  ;;  %v5130_v53 = vld [vmem:[%s6145_s17 + $0x160] ss:$16 sps:$4 sm:$0xff]   ;;  %v5132_v56 = vld [vmem:[%s6145_s17 + $0x184] ss:$16 sps:$4 sm:$0xff]   ;;  %v5134_v57 = vld [vmem:[%s6145_s17 + $0x18c] ss:$16 sps:$4 sm:$0xff]   ;;  %s314_s26 = scalar_lea.vmem %s6833_s3, %s6857_s25  ;;  %s319_s14 = scalar_lea.vmem %s6834_s4, %s6857_s25 }
  0x6f   : > { %3543 = vmatpush1.bf16.msra.mxu0 %v5088_v18  ;;  %3871 = vmatpush1.bf16.msra.mxu1 %v5089_v19  ;;  %v5136_v59 = vld [vmem:[%s6145_s17 + $0x180] ss:$16 sps:$4 sm:$0xff]   ;;  %v5137_v61 = vld [vmem:[%s6145_s17 + $0x188] ss:$16 sps:$4 sm:$0xff]   ;;  %v5138_v62 = vld [vmem:[%s6145_s17 + $0x1a4] ss:$16 sps:$4 sm:$0xff]  }
  0x70   : > { %3544 = vmatprep.subr.bf16.mxu0 %v5090_v20  ;;  %3872 = vmatprep.subr.bf16.mxu1 %v5092_v21  ;;  %v846_v54 = vrot.slane %v6216_v52, %v6209_v49  ;;  %v5140_v63 = vld [vmem:[%s6145_s17 + $0x1ac] ss:$16 sps:$4 sm:$0xff]   ;;  %v5142_v0 = vld [vmem:[%s6145_s17 + $0x1a0] ss:$16 sps:$4 sm:$0xff]   ;;  %v5143_v1 = vld [vmem:[%s6145_s17 + $0x1a8] ss:$16 sps:$4 sm:$0xff]  }
  0x71   : > { %v5144_v2 = vld [vmem:[%s6145_s17 + $0x1c4] ss:$16 sps:$4 sm:$0xff]   ;;  %v5146_v3 = vld [vmem:[%s6145_s17 + $0x1cc] ss:$16 sps:$4 sm:$0xff]   ;;  %v5148_v4 = vld [vmem:[%s6145_s17 + $0x1c0] ss:$16 sps:$4 sm:$0xff]  }
  0x72   : > { %v854_v58 = vcombine.high %v846_v54, %v846_v54  ;;  %v5149_v5 = vld [vmem:[%s6145_s17 + $0x1c8] ss:$16 sps:$4 sm:$0xff]   ;;  %v5150_v6 = vld [vmem:[%s6145_s17 + $0x1e4] ss:$16 sps:$4 sm:$0xff]   ;;  %v5152_v7 = vld [vmem:[%s6145_s17 + $0x1ec] ss:$16 sps:$4 sm:$0xff]   ;;  %v6243_v13 = vrot.slane %v846_v54, %v6209_v49 }
  0x73   : > { %3545 = vmatpush1.bf16.msra.mxu0 %v5094_v22  ;;  %3873 = vmatpush1.bf16.msra.mxu1 %v5095_v23  ;;  %v5154_v8 = vld [vmem:[%s6145_s17 + $0x1e0] ss:$16 sps:$4 sm:$0xff]   ;;  %v5155_v9 = vld [vmem:[%s6145_s17 + $0x1e8] ss:$16 sps:$4 sm:$0xff]   ;;  %v5158_v10 = vld [vmem:[%s6145_s17 + $0x204] ss:$16 sps:$4 sm:$0xff]  }
  0x74   : > { %3546 = vmatprep.subr.bf16.mxu0 %v5096_v24  ;;  %3874 = vmatprep.subr.bf16.mxu1 %v5098_v25  ;;  %v876_v60 = vrot.slane %v854_v58, %v6209_v49  ;;  %v5161_v11 = vld [vmem:[%s6145_s17 + $0x20c] ss:$16 sps:$4 sm:$0xff]   ;;  %v5156_v12 = vld [vmem:[%s6145_s17 + $0x200] ss:$16 sps:$4 sm:$0xff]   ;;  %v5159_v14 = vld [vmem:[%s6145_s17 + $0x208] ss:$16 sps:$4 sm:$0xff]  }
  0x75   : > { %v5164_v15 = vld [vmem:[%s6145_s17 + $0x224] ss:$16 sps:$4 sm:$0xff]   ;;  %v5167_v16 = vld [vmem:[%s6145_s17 + $0x22c] ss:$16 sps:$4 sm:$0xff]   ;;  %v5162_v18 = vld [vmem:[%s6145_s17 + $0x220] ss:$16 sps:$4 sm:$0xff]  }
  0x76   : > { %3566 = vmatprep.mubr.bf16.mxu0 %v876_v60  ;;  %3894 = vmatprep.mubr.bf16.mxu1 %v876_v60  ;;  %v886_v17 = vcombine.high %v876_v60, %v876_v60  ;;  %v5165_v19 = vld [vmem:[%s6145_s17 + $0x228] ss:$16 sps:$4 sm:$0xff]   ;;  %v5170_v20 = vld [vmem:[%s6145_s17 + $0x244] ss:$16 sps:$4 sm:$0xff]   ;;  %v5173_v21 = vld [vmem:[%s6145_s17 + $0x24c] ss:$16 sps:$4 sm:$0xff]  }
  0x77   : > { %3547 = vmatpush1.bf16.msra.mxu0 %v5100_v26  ;;  %3875 = vmatpush1.bf16.msra.mxu1 %v5101_v27  ;;  %v5168_v22 = vld [vmem:[%s6145_s17 + $0x240] ss:$16 sps:$4 sm:$0xff]   ;;  %v5171_v23 = vld [vmem:[%s6145_s17 + $0x248] ss:$16 sps:$4 sm:$0xff]   ;;  %v5176_v24 = vld [vmem:[%s6145_s17 + $0x264] ss:$16 sps:$4 sm:$0xff]  }
  0x78   : > { %3548 = vmatprep.subr.bf16.mxu0 %v5102_v28  ;;  %3876 = vmatprep.subr.bf16.mxu1 %v5104_v29  ;;  %v5179_v25 = vld [vmem:[%s6145_s17 + $0x26c] ss:$16 sps:$4 sm:$0xff]   ;;  %v5174_v26 = vld [vmem:[%s6145_s17 + $0x260] ss:$16 sps:$4 sm:$0xff]   ;;  %v5177_v27 = vld [vmem:[%s6145_s17 + $0x268] ss:$16 sps:$4 sm:$0xff]  }
  0x79   : > { %v5182_v28 = vld [vmem:[%s6145_s17 + $0x284] ss:$16 sps:$4 sm:$0xff]   ;;  %v5185_v29 = vld [vmem:[%s6145_s17 + $0x28c] ss:$16 sps:$4 sm:$0xff]   ;;  %v5210_v54 = vld [vmem:[%s6145_s17 + $0x320] ss:$16 sps:$4 sm:$0xff]  }
  0x7a   : > { %v5194_v36 = vld [vmem:[%s6145_s17 + $0x2c4] ss:$16 sps:$4 sm:$0xff]   ;;  %v5197_v37 = vld [vmem:[%s6145_s17 + $0x2cc] ss:$16 sps:$4 sm:$0xff]   ;;  %v5216_v58 = vld [vmem:[%s6145_s17 + $0x340] ss:$16 sps:$4 sm:$0xff]  }
  0x7b   : > { %3549 = vmatpush1.bf16.msra.mxu0 %v5106_v30  ;;  %3877 = vmatpush1.bf16.msra.mxu1 %v5107_v31  ;;  %v5180_v30 = vld [vmem:[%s6145_s17 + $0x280] ss:$16 sps:$4 sm:$0xff]   ;;  %v5183_v31 = vld [vmem:[%s6145_s17 + $0x288] ss:$16 sps:$4 sm:$0xff]   ;;  %v5203_v42 = vld [vmem:[%s6145_s17 + $0x2ec] ss:$16 sps:$4 sm:$0xff]  }
  0x7c   : > { %3550 = vmatprep.subr.bf16.mxu0 %v5108_v32  ;;  %3878 = vmatprep.subr.bf16.mxu1 %v5110_v33  ;;  %v5188_v32 = vld [vmem:[%s6145_s17 + $0x2a4] ss:$16 sps:$4 sm:$0xff]   ;;  %v5191_v33 = vld [vmem:[%s6145_s17 + $0x2ac] ss:$16 sps:$4 sm:$0xff]   ;;  %s4944_s16 = sshll.u32 %s6020_s22, 6  ;;  %vm4281_vm0 = vcmp.lt.s32.totalorder %v843_v38, 512 }
  0x7d   : > { %v5224_v60 = vld [vmem:[%s6145_s17 + $0x364] ss:$16 sps:$4 sm:$0xff]   ;;  %s6786_s11 = scalar_lea.hbm %s6835_s5, %s4944_s16  ;;  %s4285_s22 = scalar_lea.sflag [#allocation4], %s6141_s13 }
  0x7e   : > { %p6849_p12 = scmp.ne.s32.totalorder %s6841_s30, 0 }
  0x7f   : > { %3551 = vmatpush1.bf16.msra.mxu0 %v5112_v34  ;;  %3879 = vmatpush1.bf16.msra.mxu1 %v5113_v35  ;;  %v5186_v34 = vld [vmem:[%s6145_s17 + $0x2a0] ss:$16 sps:$4 sm:$0xff]   ;;  %v5189_v35 = vld [vmem:[%s6145_s17 + $0x2a8] ss:$16 sps:$4 sm:$0xff]  }
  0x80   : > { %3552 = vmatprep.subr.bf16.mxu0 %v5114_v39  ;;  %3880 = vmatprep.subr.bf16.mxu1 %v5116_v40  ;;  %v5192_v39 = vld [vmem:[%s6145_s17 + $0x2c0] ss:$16 sps:$4 sm:$0xff]   ;;  %v5195_v40 = vld [vmem:[%s6145_s17 + $0x2c8] ss:$16 sps:$4 sm:$0xff]  }
  0x83   : > { %3553 = vmatpush1.bf16.msra.mxu0 %v5118_v41  ;;  %3881 = vmatpush1.bf16.msra.mxu1 %v5119_v44  ;;  %v5200_v41 = vld [vmem:[%s6145_s17 + $0x2e4] ss:$16 sps:$4 sm:$0xff]   ;;  %v5198_v44 = vld [vmem:[%s6145_s17 + $0x2e0] ss:$16 sps:$4 sm:$0xff]  }
  0x84   : > { %3554 = vmatprep.subr.bf16.mxu0 %v5120_v45  ;;  %3882 = vmatprep.subr.bf16.mxu1 %v5122_v46  ;;  %v5201_v45 = vld [vmem:[%s6145_s17 + $0x2e8] ss:$16 sps:$4 sm:$0xff]   ;;  %v5206_v46 = vld [vmem:[%s6145_s17 + $0x304] ss:$16 sps:$4 sm:$0xff]  }
  0x87   : > { %3555 = vmatpush1.bf16.msra.mxu0 %v5124_v47  ;;  %3883 = vmatpush1.bf16.msra.mxu1 %v5125_v48  ;;  %v5209_v47 = vld [vmem:[%s6145_s17 + $0x30c] ss:$16 sps:$4 sm:$0xff]   ;;  %v5204_v48 = vld [vmem:[%s6145_s17 + $0x300] ss:$16 sps:$4 sm:$0xff]  }
  0x88   : > { %3556 = vmatprep.subr.bf16.mxu0 %v5126_v50  ;;  %3884 = vmatprep.subr.bf16.mxu1 %v5128_v51  ;;  %v5207_v50 = vld [vmem:[%s6145_s17 + $0x308] ss:$16 sps:$4 sm:$0xff]   ;;  %v5212_v51 = vld [vmem:[%s6145_s17 + $0x324] ss:$16 sps:$4 sm:$0xff]  }
  0x8b   : > { %3557 = vmatpush1.bf16.msra.mxu0 %v5130_v53  ;;  %3885 = vmatpush1.bf16.msra.mxu1 %v5131_v55  ;;  %v5215_v53 = vld [vmem:[%s6145_s17 + $0x32c] ss:$16 sps:$4 sm:$0xff]   ;;  %v5213_v55 = vld [vmem:[%s6145_s17 + $0x328] ss:$16 sps:$4 sm:$0xff]  }
  0x8c   : > { %3558 = vmatprep.subr.bf16.mxu0 %v5132_v56  ;;  %3886 = vmatprep.subr.bf16.mxu1 %v5134_v57  ;;  %v5218_v56 = vld [vmem:[%s6145_s17 + $0x344] ss:$16 sps:$4 sm:$0xff]   ;;  %v5221_v57 = vld [vmem:[%s6145_s17 + $0x34c] ss:$16 sps:$4 sm:$0xff]  }
  0x8f   : > { %3559 = vmatpush1.bf16.msra.mxu0 %v5136_v59  ;;  %3887 = vmatpush1.bf16.msra.mxu1 %v5137_v61  ;;  %v5219_v59 = vld [vmem:[%s6145_s17 + $0x348] ss:$16 sps:$4 sm:$0xff]   ;;  %v5227_v61 = vld [vmem:[%s6145_s17 + $0x36c] ss:$16 sps:$4 sm:$0xff]  }
  0x90   : > { %3560 = vmatprep.subr.bf16.mxu0 %v5138_v62  ;;  %3888 = vmatprep.subr.bf16.mxu1 %v5140_v63  ;;  %v5222_v62 = vld [vmem:[%s6145_s17 + $0x360] ss:$16 sps:$4 sm:$0xff]   ;;  %v5225_v63 = vld [vmem:[%s6145_s17 + $0x368] ss:$16 sps:$4 sm:$0xff]  }
  0x93   : > { %3561 = vmatpush1.bf16.msra.mxu0 %v5142_v0  ;;  %3889 = vmatpush1.bf16.msra.mxu1 %v5143_v1  ;;  %v5230_v0 = vld [vmem:[%s6145_s17 + $0x384] ss:$16 sps:$4 sm:$0xff]   ;;  %v5233_v1 = vld [vmem:[%s6145_s17 + $0x38c] ss:$16 sps:$4 sm:$0xff]  }
  0x94   : > { %3562 = vmatprep.subr.bf16.mxu0 %v5144_v2  ;;  %3890 = vmatprep.subr.bf16.mxu1 %v5146_v3  ;;  %v5228_v2 = vld [vmem:[%s6145_s17 + $0x380] ss:$16 sps:$4 sm:$0xff]   ;;  %v5231_v3 = vld [vmem:[%s6145_s17 + $0x388] ss:$16 sps:$4 sm:$0xff]  }
  0x97   : > { %3563 = vmatpush1.bf16.msra.mxu0 %v5148_v4  ;;  %3891 = vmatpush1.bf16.msra.mxu1 %v5149_v5  ;;  %v5236_v4 = vld [vmem:[%s6145_s17 + $0x3a4] ss:$16 sps:$4 sm:$0xff]   ;;  %v5239_v5 = vld [vmem:[%s6145_s17 + $0x3ac] ss:$16 sps:$4 sm:$0xff]  }
  0x98   : > { %3564 = vmatprep.subr.bf16.mxu0 %v5150_v6  ;;  %3892 = vmatprep.subr.bf16.mxu1 %v5152_v7  ;;  %v5234_v6 = vld [vmem:[%s6145_s17 + $0x3a0] ss:$16 sps:$4 sm:$0xff]   ;;  %v5237_v7 = vld [vmem:[%s6145_s17 + $0x3a8] ss:$16 sps:$4 sm:$0xff]  }
  0x9b   : > { %3565 = vmatpush1.bf16.msra.mxu0 %v5154_v8  ;;  %3893 = vmatpush1.bf16.msra.mxu1 %v5155_v9  ;;  %v5242_v8 = vld [vmem:[%s6145_s17 + $0x3c4] ss:$16 sps:$4 sm:$0xff]   ;;  %v5245_v9 = vld [vmem:[%s6145_s17 + $0x3cc] ss:$16 sps:$4 sm:$0xff]  }
  0x9c   : > { %3575 = vmatprep.subr.bf16.mxu0 %v5158_v10  ;;  %3903 = vmatprep.subr.bf16.mxu1 %v5161_v11  ;;  %v839_v10 = vcombine.high %v6216_v52, %v6216_v52  ;;  %v5240_v11 = vld [vmem:[%s6145_s17 + $0x3c0] ss:$16 sps:$4 sm:$0xff]   ;;  %v5249_v52 = vld [vmem:[%s6145_s17 + $0x3e8] ss:$16 sps:$4 sm:$0xff]  }
  0x9e   : > { %3567 = vmatmul.mubr.bf16.vlgmr.msra.gmra.mrb[0].mxu0 %v6243_v13  ;;  %3895 = vmatmul.mubr.bf16.vlgmr.msra.gmra.mrb[0].mxu1 %v6243_v13 }
  0x9f   : > { %3576 = vmatpush1.bf16.msra.mxu0 %v5156_v12  ;;  %3904 = vmatpush1.bf16.msra.mxu1 %v5159_v14  ;;  %v5243_v12 = vld [vmem:[%s6145_s17 + $0x3c8] ss:$16 sps:$4 sm:$0xff]   ;;  %v5248_v14 = vld [vmem:[%s6145_s17 + $0x3e4] ss:$16 sps:$4 sm:$0xff]  }
  0xa0   : > { %3577 = vmatprep.subr.bf16.mxu0 %v5164_v15  ;;  %3905 = vmatprep.subr.bf16.mxu1 %v5167_v16  ;;  %v5251_v15 = vld [vmem:[%s6145_s17 + $0x3ec] ss:$16 sps:$4 sm:$0xff]   ;;  %v6309_v16 = vrot.slane %v839_v10, %v6209_v49  ;;  %v5324_v10 = vld [vmem:[%s6145_s17 + $0x580] ss:$16 sps:$4 sm:$0xff]  }
  0xa1   : > { %3607 = vmatprep.mubr.bf16.mxu0 %v886_v17  ;;  %3935 = vmatprep.mubr.bf16.mxu1 %v886_v17  ;;  %v5246_v17 = vld [vmem:[%s6145_s17 + $0x3e0] ss:$16 sps:$4 sm:$0xff]  }
  0xa3   : > { %3578 = vmatpush1.bf16.msra.mxu0 %v5162_v18  ;;  %3906 = vmatpush1.bf16.msra.mxu1 %v5165_v19  ;;  %v5254_v18 = vld [vmem:[%s6145_s17 + $0x404] ss:$16 sps:$4 sm:$0xff]   ;;  %v5257_v19 = vld [vmem:[%s6145_s17 + $0x40c] ss:$16 sps:$4 sm:$0xff]  }
  0xa4   : > { %3579 = vmatprep.subr.bf16.mxu0 %v5170_v20  ;;  %3907 = vmatprep.subr.bf16.mxu1 %v5173_v21  ;;  %v855_v20 = vcombine.high %v6309_v16, %v6309_v16  ;;  %v5252_v21 = vld [vmem:[%s6145_s17 + $0x400] ss:$16 sps:$4 sm:$0xff]  }
  0xa7   : > { %3580 = vmatpush1.bf16.msra.mxu0 %v5168_v22  ;;  %3908 = vmatpush1.bf16.msra.mxu1 %v5171_v23  ;;  %v884_v22 = vcombine.high %v6243_v13, %v6243_v13  ;;  %v5255_v23 = vld [vmem:[%s6145_s17 + $0x408] ss:$16 sps:$4 sm:$0xff]  }
  0xa8   : > { %3581 = vmatprep.subr.bf16.mxu0 %v5176_v24  ;;  %3909 = vmatprep.subr.bf16.mxu1 %v5179_v25  ;;  %v5260_v24 = vld [vmem:[%s6145_s17 + $0x424] ss:$16 sps:$4 sm:$0xff]   ;;  %v5263_v25 = vld [vmem:[%s6145_s17 + $0x42c] ss:$16 sps:$4 sm:$0xff]   ;;  %v5261_v13 = vld [vmem:[%s6145_s17 + $0x428] ss:$16 sps:$4 sm:$0xff]  }
  0xab   : > { %3582 = vmatpush1.bf16.msra.mxu0 %v5174_v26  ;;  %3910 = vmatpush1.bf16.msra.mxu1 %v5177_v27  ;;  %v6324_v26 = vrot.slane %v855_v20, %v6209_v49  ;;  %v5258_v27 = vld [vmem:[%s6145_s17 + $0x420] ss:$16 sps:$4 sm:$0xff]   ;;  %v5339_v20 = vld [vmem:[%s6145_s17 + $0x5c8] ss:$16 sps:$4 sm:$0xff]  }
  0xac   : > { %3583 = vmatprep.subr.bf16.mxu0 %v5182_v28  ;;  %3911 = vmatprep.subr.bf16.mxu1 %v5185_v29  ;;  %v5266_v28 = vld [vmem:[%s6145_s17 + $0x444] ss:$16 sps:$4 sm:$0xff]   ;;  %v5269_v29 = vld [vmem:[%s6145_s17 + $0x44c] ss:$16 sps:$4 sm:$0xff]  }
  0xaf   : > { %3584 = vmatpush1.bf16.msra.mxu0 %v5180_v30  ;;  %3912 = vmatpush1.bf16.msra.mxu1 %v5183_v31  ;;  %v5264_v30 = vld [vmem:[%s6145_s17 + $0x440] ss:$16 sps:$4 sm:$0xff]   ;;  %v5267_v31 = vld [vmem:[%s6145_s17 + $0x448] ss:$16 sps:$4 sm:$0xff]  }
  0xb0   : > { %3585 = vmatprep.subr.bf16.mxu0 %v5188_v32  ;;  %3913 = vmatprep.subr.bf16.mxu1 %v5191_v33  ;;  %v5272_v32 = vld [vmem:[%s6145_s17 + $0x464] ss:$16 sps:$4 sm:$0xff]   ;;  %v5275_v33 = vld [vmem:[%s6145_s17 + $0x46c] ss:$16 sps:$4 sm:$0xff]  }
  0xb3   : > { %3586 = vmatpush1.bf16.msra.mxu0 %v5186_v34  ;;  %3914 = vmatpush1.bf16.msra.mxu1 %v5189_v35  ;;  %v5270_v34 = vld [vmem:[%s6145_s17 + $0x460] ss:$16 sps:$4 sm:$0xff]   ;;  %v5273_v35 = vld [vmem:[%s6145_s17 + $0x468] ss:$16 sps:$4 sm:$0xff]  }
  0xb4   : > { %3587 = vmatprep.subr.bf16.mxu0 %v5194_v36  ;;  %3915 = vmatprep.subr.bf16.mxu1 %v5197_v37  ;;  %v5278_v36 = vld [vmem:[%s6145_s17 + $0x484] ss:$16 sps:$4 sm:$0xff]   ;;  %v5281_v37 = vld [vmem:[%s6145_s17 + $0x48c] ss:$16 sps:$4 sm:$0xff]  }
  0xb7   : > { %3588 = vmatpush1.bf16.msra.mxu0 %v5192_v39  ;;  %3916 = vmatpush1.bf16.msra.mxu1 %v5195_v40  ;;  %v5276_v39 = vld [vmem:[%s6145_s17 + $0x480] ss:$16 sps:$4 sm:$0xff]   ;;  %v5279_v40 = vld [vmem:[%s6145_s17 + $0x488] ss:$16 sps:$4 sm:$0xff]  }
  0xb8   : > { %3589 = vmatprep.subr.bf16.mxu0 %v5200_v41  ;;  %3917 = vmatprep.subr.bf16.mxu1 %v5203_v42  ;;  %v5284_v41 = vld [vmem:[%s6145_s17 + $0x4a4] ss:$16 sps:$4 sm:$0xff]   ;;  %v5287_v42 = vld [vmem:[%s6145_s17 + $0x4ac] ss:$16 sps:$4 sm:$0xff]  }
  0xbb   : > { %3590 = vmatpush1.bf16.msra.mxu0 %v5198_v44  ;;  %3918 = vmatpush1.bf16.msra.mxu1 %v5201_v45  ;;  %v5282_v44 = vld [vmem:[%s6145_s17 + $0x4a0] ss:$16 sps:$4 sm:$0xff]   ;;  %v5285_v45 = vld [vmem:[%s6145_s17 + $0x4a8] ss:$16 sps:$4 sm:$0xff]  }
  0xbc   : > { %3591 = vmatprep.subr.bf16.mxu0 %v5206_v46  ;;  %3919 = vmatprep.subr.bf16.mxu1 %v5209_v47  ;;  %v5290_v46 = vld [vmem:[%s6145_s17 + $0x4c4] ss:$16 sps:$4 sm:$0xff]   ;;  %v5293_v47 = vld [vmem:[%s6145_s17 + $0x4cc] ss:$16 sps:$4 sm:$0xff]  }
  0xbf   : > { %3592 = vmatpush1.bf16.msra.mxu0 %v5204_v48  ;;  %3920 = vmatpush1.bf16.msra.mxu1 %v5207_v50  ;;  %v5288_v48 = vld [vmem:[%s6145_s17 + $0x4c0] ss:$16 sps:$4 sm:$0xff]   ;;  %v5291_v50 = vld [vmem:[%s6145_s17 + $0x4c8] ss:$16 sps:$4 sm:$0xff]  }
  0xc0   : > { %3593 = vmatprep.subr.bf16.mxu0 %v5212_v51  ;;  %3921 = vmatprep.subr.bf16.mxu1 %v5215_v53  ;;  %v5296_v51 = vld [vmem:[%s6145_s17 + $0x4e4] ss:$16 sps:$4 sm:$0xff]   ;;  %v5299_v53 = vld [vmem:[%s6145_s17 + $0x4ec] ss:$16 sps:$4 sm:$0xff]  }
  0xc3   : > { %3594 = vmatpush1.bf16.msra.mxu0 %v5210_v54  ;;  %3922 = vmatpush1.bf16.msra.mxu1 %v5213_v55  ;;  %v5294_v54 = vld [vmem:[%s6145_s17 + $0x4e0] ss:$16 sps:$4 sm:$0xff]   ;;  %v5297_v55 = vld [vmem:[%s6145_s17 + $0x4e8] ss:$16 sps:$4 sm:$0xff]  }
  0xc4   : > { %3595 = vmatprep.subr.bf16.mxu0 %v5218_v56  ;;  %3923 = vmatprep.subr.bf16.mxu1 %v5221_v57  ;;  %v5302_v56 = vld [vmem:[%s6145_s17 + $0x504] ss:$16 sps:$4 sm:$0xff]   ;;  %v5305_v57 = vld [vmem:[%s6145_s17 + $0x50c] ss:$16 sps:$4 sm:$0xff]  }
  0xc7   : > { %3596 = vmatpush1.bf16.msra.mxu0 %v5216_v58  ;;  %3924 = vmatpush1.bf16.msra.mxu1 %v5219_v59  ;;  %v5300_v58 = vld [vmem:[%s6145_s17 + $0x500] ss:$16 sps:$4 sm:$0xff]   ;;  %v5303_v59 = vld [vmem:[%s6145_s17 + $0x508] ss:$16 sps:$4 sm:$0xff]  }
  0xc8   : > { %3597 = vmatprep.subr.bf16.mxu0 %v5224_v60  ;;  %3925 = vmatprep.subr.bf16.mxu1 %v5227_v61  ;;  %v5308_v60 = vld [vmem:[%s6145_s17 + $0x524] ss:$16 sps:$4 sm:$0xff]   ;;  %v5311_v61 = vld [vmem:[%s6145_s17 + $0x52c] ss:$16 sps:$4 sm:$0xff]  }
  0xcb   : > { %3598 = vmatpush1.bf16.msra.mxu0 %v5222_v62  ;;  %3926 = vmatpush1.bf16.msra.mxu1 %v5225_v63  ;;  %v5306_v62 = vld [vmem:[%s6145_s17 + $0x520] ss:$16 sps:$4 sm:$0xff]   ;;  %v5309_v63 = vld [vmem:[%s6145_s17 + $0x528] ss:$16 sps:$4 sm:$0xff]  }
  0xcc   : > { %3599 = vmatprep.subr.bf16.mxu0 %v5230_v0  ;;  %3927 = vmatprep.subr.bf16.mxu1 %v5233_v1  ;;  %v5314_v0 = vld [vmem:[%s6145_s17 + $0x544] ss:$16 sps:$4 sm:$0xff]   ;;  %v5317_v1 = vld [vmem:[%s6145_s17 + $0x54c] ss:$16 sps:$4 sm:$0xff]  }
  0xcf   : > { %3600 = vmatpush1.bf16.msra.mxu0 %v5228_v2  ;;  %3928 = vmatpush1.bf16.msra.mxu1 %v5231_v3  ;;  %v5312_v2 = vld [vmem:[%s6145_s17 + $0x540] ss:$16 sps:$4 sm:$0xff]   ;;  %v5315_v3 = vld [vmem:[%s6145_s17 + $0x548] ss:$16 sps:$4 sm:$0xff]  }
  0xd0   : > { %3601 = vmatprep.subr.bf16.mxu0 %v5236_v4  ;;  %3929 = vmatprep.subr.bf16.mxu1 %v5239_v5  ;;  %v5320_v4 = vld [vmem:[%s6145_s17 + $0x564] ss:$16 sps:$4 sm:$0xff]   ;;  %v5323_v5 = vld [vmem:[%s6145_s17 + $0x56c] ss:$16 sps:$4 sm:$0xff]  }
  0xd3   : > { %3602 = vmatpush1.bf16.msra.mxu0 %v5234_v6  ;;  %3930 = vmatpush1.bf16.msra.mxu1 %v5237_v7  ;;  %v5318_v6 = vld [vmem:[%s6145_s17 + $0x560] ss:$16 sps:$4 sm:$0xff]   ;;  %v5321_v7 = vld [vmem:[%s6145_s17 + $0x568] ss:$16 sps:$4 sm:$0xff]  }
  0xd4   : > { %3603 = vmatprep.subr.bf16.mxu0 %v5242_v8  ;;  %3931 = vmatprep.subr.bf16.mxu1 %v5245_v9  ;;  %v5326_v8 = vld [vmem:[%s6145_s17 + $0x584] ss:$16 sps:$4 sm:$0xff]   ;;  %v5329_v9 = vld [vmem:[%s6145_s17 + $0x58c] ss:$16 sps:$4 sm:$0xff]  }
  0xd7   : > { %3604 = vmatpush1.bf16.msra.mxu0 %v5240_v11  ;;  %3932 = vmatpush1.bf16.msra.mxu1 %v5243_v12  ;;  %v5327_v11 = vld [vmem:[%s6145_s17 + $0x588] ss:$16 sps:$4 sm:$0xff]   ;;  %v5332_v12 = vld [vmem:[%s6145_s17 + $0x5a4] ss:$16 sps:$4 sm:$0xff]  }
  0xd8   : > { %3605 = vmatprep.subr.bf16.mxu0 %v5248_v14  ;;  %3933 = vmatprep.subr.bf16.mxu1 %v5251_v15  ;;  %v5335_v14 = vld [vmem:[%s6145_s17 + $0x5ac] ss:$16 sps:$4 sm:$0xff]   ;;  %v5330_v15 = vld [vmem:[%s6145_s17 + $0x5a0] ss:$16 sps:$4 sm:$0xff]  }
  0xdb   : > { %3606 = vmatpush1.bf16.msra.mxu0 %v5246_v17  ;;  %3934 = vmatpush1.bf16.msra.mxu1 %v5249_v52  ;;  %v5333_v17 = vld [vmem:[%s6145_s17 + $0x5a8] ss:$16 sps:$4 sm:$0xff]   ;;  %v5338_v52 = vld [vmem:[%s6145_s17 + $0x5c4] ss:$16 sps:$4 sm:$0xff]  }
  0xdc   : > { %3616 = vmatprep.subr.bf16.mxu0 %v5254_v18  ;;  %3944 = vmatprep.subr.bf16.mxu1 %v5257_v19  ;;  %v5341_v18 = vld [vmem:[%s6145_s17 + $0x5cc] ss:$16 sps:$4 sm:$0xff]   ;;  %v5336_v19 = vld [vmem:[%s6145_s17 + $0x5c0] ss:$16 sps:$4 sm:$0xff]  }
  0xde   : > { %3608 = vmatmul.mubr.bf16.vlgmr.msra.gmra.mrb[0].mxu0 %v884_v22  ;;  %3936 = vmatmul.mubr.bf16.vlgmr.msra.gmra.mrb[0].mxu1 %v884_v22  ;;  %v5347_v22 = vld [vmem:[%s6145_s17 + $0x5ec] ss:$16 sps:$4 sm:$0xff]  }
  0xdf   : > { %3617 = vmatpush1.bf16.msra.mxu0 %v5252_v21  ;;  %3945 = vmatpush1.bf16.msra.mxu1 %v5255_v23  ;;  %v5344_v21 = vld [vmem:[%s6145_s17 + $0x5e4] ss:$16 sps:$4 sm:$0xff]   ;;  %v5342_v23 = vld [vmem:[%s6145_s17 + $0x5e0] ss:$16 sps:$4 sm:$0xff]  }
  0xe0   : > { %3618 = vmatprep.subr.bf16.mxu0 %v5260_v24  ;;  %3946 = vmatprep.subr.bf16.mxu1 %v5263_v25  ;;  %v5345_v24 = vld [vmem:[%s6145_s17 + $0x5e8] ss:$16 sps:$4 sm:$0xff]   ;;  %v5351_v25 = vld [vmem:[%s6145_s17 + $0x604] ss:$16 sps:$4 sm:$0xff]  }
  0xe1   : > { %3648 = vmatprep.mubr.bf16.mxu0 %v6324_v26  ;;  %3976 = vmatprep.mubr.bf16.mxu1 %v6324_v26 }
  0xe3   : > { %3619 = vmatpush1.bf16.msra.mxu0 %v5258_v27  ;;  %3947 = vmatpush1.bf16.msra.mxu1 %v5261_v13  ;;  %v5354_v27 = vld [vmem:[%s6145_s17 + $0x60c] ss:$16 sps:$4 sm:$0xff]   ;;  %v5349_v13 = vld [vmem:[%s6145_s17 + $0x600] ss:$16 sps:$4 sm:$0xff]  }
  0xe4   : > { %3620 = vmatprep.subr.bf16.mxu0 %v5266_v28  ;;  %3948 = vmatprep.subr.bf16.mxu1 %v5269_v29  ;;  %v6391_v28 = vrot.slane %v6309_v16, %v6209_v49  ;;  %v5352_v29 = vld [vmem:[%s6145_s17 + $0x608] ss:$16 sps:$4 sm:$0xff]   ;;  %v5355_v16 = vld [vmem:[%s6145_s17 + $0x620] ss:$16 sps:$4 sm:$0xff]  }
  0xe7   : > { %3621 = vmatpush1.bf16.msra.mxu0 %v5264_v30  ;;  %3949 = vmatpush1.bf16.msra.mxu1 %v5267_v31  ;;  %v5357_v30 = vld [vmem:[%s6145_s17 + $0x624] ss:$16 sps:$4 sm:$0xff]   ;;  %v5360_v31 = vld [vmem:[%s6145_s17 + $0x62c] ss:$16 sps:$4 sm:$0xff]  }
  0xe8   : > { %3622 = vmatprep.subr.bf16.mxu0 %v5272_v32  ;;  %3950 = vmatprep.subr.bf16.mxu1 %v5275_v33  ;;  %v887_v32 = vcombine.high %v6324_v26, %v6324_v26  ;;  %v5358_v33 = vld [vmem:[%s6145_s17 + $0x628] ss:$16 sps:$4 sm:$0xff]   ;;  %v5361_v26 = vld [vmem:[%s6145_s17 + $0x640] ss:$16 sps:$4 sm:$0xff]  }
  0xeb   : > { %3623 = vmatpush1.bf16.msra.mxu0 %v5270_v34  ;;  %3951 = vmatpush1.bf16.msra.mxu1 %v5273_v35  ;;  %v5363_v34 = vld [vmem:[%s6145_s17 + $0x644] ss:$16 sps:$4 sm:$0xff]   ;;  %v5366_v35 = vld [vmem:[%s6145_s17 + $0x64c] ss:$16 sps:$4 sm:$0xff]  }
  0xec   : > { %3624 = vmatprep.subr.bf16.mxu0 %v5278_v36  ;;  %3952 = vmatprep.subr.bf16.mxu1 %v5281_v37  ;;  %v5364_v36 = vld [vmem:[%s6145_s17 + $0x648] ss:$16 sps:$4 sm:$0xff]   ;;  %v5369_v37 = vld [vmem:[%s6145_s17 + $0x664] ss:$16 sps:$4 sm:$0xff]  }
  0xef   : > { %3625 = vmatpush1.bf16.msra.mxu0 %v5276_v39  ;;  %3953 = vmatpush1.bf16.msra.mxu1 %v5279_v40  ;;  %v5372_v39 = vld [vmem:[%s6145_s17 + $0x66c] ss:$16 sps:$4 sm:$0xff]   ;;  %v5367_v40 = vld [vmem:[%s6145_s17 + $0x660] ss:$16 sps:$4 sm:$0xff]  }
  0xf0   : > { %3626 = vmatprep.subr.bf16.mxu0 %v5284_v41  ;;  %3954 = vmatprep.subr.bf16.mxu1 %v5287_v42  ;;  %v5370_v41 = vld [vmem:[%s6145_s17 + $0x668] ss:$16 sps:$4 sm:$0xff]   ;;  %v5375_v42 = vld [vmem:[%s6145_s17 + $0x684] ss:$16 sps:$4 sm:$0xff]  }
  0xf3   : > { %3627 = vmatpush1.bf16.msra.mxu0 %v5282_v44  ;;  %3955 = vmatpush1.bf16.msra.mxu1 %v5285_v45  ;;  %v5378_v44 = vld [vmem:[%s6145_s17 + $0x68c] ss:$16 sps:$4 sm:$0xff]   ;;  %v5373_v45 = vld [vmem:[%s6145_s17 + $0x680] ss:$16 sps:$4 sm:$0xff]  }
  0xf4   : > { %3628 = vmatprep.subr.bf16.mxu0 %v5290_v46  ;;  %3956 = vmatprep.subr.bf16.mxu1 %v5293_v47  ;;  %v5376_v46 = vld [vmem:[%s6145_s17 + $0x688] ss:$16 sps:$4 sm:$0xff]   ;;  %v5381_v47 = vld [vmem:[%s6145_s17 + $0x6a4] ss:$16 sps:$4 sm:$0xff]  }
  0xf7   : > { %3629 = vmatpush1.bf16.msra.mxu0 %v5288_v48  ;;  %3957 = vmatpush1.bf16.msra.mxu1 %v5291_v50  ;;  %v5384_v48 = vld [vmem:[%s6145_s17 + $0x6ac] ss:$16 sps:$4 sm:$0xff]   ;;  %v5379_v50 = vld [vmem:[%s6145_s17 + $0x6a0] ss:$16 sps:$4 sm:$0xff]  }
  0xf8   : > { %3630 = vmatprep.subr.bf16.mxu0 %v5296_v51  ;;  %3958 = vmatprep.subr.bf16.mxu1 %v5299_v53  ;;  %v5382_v51 = vld [vmem:[%s6145_s17 + $0x6a8] ss:$16 sps:$4 sm:$0xff]   ;;  %v5387_v53 = vld [vmem:[%s6145_s17 + $0x6c4] ss:$16 sps:$4 sm:$0xff]  }
  0xfb   : > { %3631 = vmatpush1.bf16.msra.mxu0 %v5294_v54  ;;  %3959 = vmatpush1.bf16.msra.mxu1 %v5297_v55  ;;  %v5390_v54 = vld [vmem:[%s6145_s17 + $0x6cc] ss:$16 sps:$4 sm:$0xff]   ;;  %v5385_v55 = vld [vmem:[%s6145_s17 + $0x6c0] ss:$16 sps:$4 sm:$0xff]  }
  0xfc   : > { %3632 = vmatprep.subr.bf16.mxu0 %v5302_v56  ;;  %3960 = vmatprep.subr.bf16.mxu1 %v5305_v57  ;;  %v5388_v56 = vld [vmem:[%s6145_s17 + $0x6c8] ss:$16 sps:$4 sm:$0xff]   ;;  %v5393_v57 = vld [vmem:[%s6145_s17 + $0x6e4] ss:$16 sps:$4 sm:$0xff]  }
  0xff   : > { %3633 = vmatpush1.bf16.msra.mxu0 %v5300_v58  ;;  %3961 = vmatpush1.bf16.msra.mxu1 %v5303_v59  ;;  %v5396_v58 = vld [vmem:[%s6145_s17 + $0x6ec] ss:$16 sps:$4 sm:$0xff]   ;;  %v5391_v59 = vld [vmem:[%s6145_s17 + $0x6e0] ss:$16 sps:$4 sm:$0xff]  }
 0x100   : > { %3634 = vmatprep.subr.bf16.mxu0 %v5308_v60  ;;  %3962 = vmatprep.subr.bf16.mxu1 %v5311_v61  ;;  %v5394_v60 = vld [vmem:[%s6145_s17 + $0x6e8] ss:$16 sps:$4 sm:$0xff]   ;;  %v5399_v61 = vld [vmem:[%s6145_s17 + $0x704] ss:$16 sps:$4 sm:$0xff]  }
 0x103   : > { %3635 = vmatpush1.bf16.msra.mxu0 %v5306_v62  ;;  %3963 = vmatpush1.bf16.msra.mxu1 %v5309_v63  ;;  %v5402_v62 = vld [vmem:[%s6145_s17 + $0x70c] ss:$16 sps:$4 sm:$0xff]   ;;  %v5397_v63 = vld [vmem:[%s6145_s17 + $0x700] ss:$16 sps:$4 sm:$0xff]  }
 0x104   : > { %3636 = vmatprep.subr.bf16.mxu0 %v5314_v0  ;;  %3964 = vmatprep.subr.bf16.mxu1 %v5317_v1  ;;  %v5400_v0 = vld [vmem:[%s6145_s17 + $0x708] ss:$16 sps:$4 sm:$0xff]   ;;  %v5405_v1 = vld [vmem:[%s6145_s17 + $0x724] ss:$16 sps:$4 sm:$0xff]  }
 0x107   : > { %3637 = vmatpush1.bf16.msra.mxu0 %v5312_v2  ;;  %3965 = vmatpush1.bf16.msra.mxu1 %v5315_v3  ;;  %v5408_v2 = vld [vmem:[%s6145_s17 + $0x72c] ss:$16 sps:$4 sm:$0xff]   ;;  %v5403_v3 = vld [vmem:[%s6145_s17 + $0x720] ss:$16 sps:$4 sm:$0xff]  }
 0x108   : > { %3638 = vmatprep.subr.bf16.mxu0 %v5320_v4  ;;  %3966 = vmatprep.subr.bf16.mxu1 %v5323_v5  ;;  %v5406_v4 = vld [vmem:[%s6145_s17 + $0x728] ss:$16 sps:$4 sm:$0xff]   ;;  %v5411_v5 = vld [vmem:[%s6145_s17 + $0x744] ss:$16 sps:$4 sm:$0xff]  }
 0x10b   : > { %3639 = vmatpush1.bf16.msra.mxu0 %v5318_v6  ;;  %3967 = vmatpush1.bf16.msra.mxu1 %v5321_v7  ;;  %v5414_v6 = vld [vmem:[%s6145_s17 + $0x74c] ss:$16 sps:$4 sm:$0xff]   ;;  %v5409_v7 = vld [vmem:[%s6145_s17 + $0x740] ss:$16 sps:$4 sm:$0xff]  }
 0x10c   : > { %3640 = vmatprep.subr.bf16.mxu0 %v5326_v8  ;;  %3968 = vmatprep.subr.bf16.mxu1 %v5329_v9  ;;  %v5412_v8 = vld [vmem:[%s6145_s17 + $0x748] ss:$16 sps:$4 sm:$0xff]   ;;  %v5417_v9 = vld [vmem:[%s6145_s17 + $0x764] ss:$16 sps:$4 sm:$0xff]  }
 0x10f   : > { %3641 = vmatpush1.bf16.msra.mxu0 %v5324_v10  ;;  %3969 = vmatpush1.bf16.msra.mxu1 %v5327_v11  ;;  %v5420_v10 = vld [vmem:[%s6145_s17 + $0x76c] ss:$16 sps:$4 sm:$0xff]   ;;  %v5415_v11 = vld [vmem:[%s6145_s17 + $0x760] ss:$16 sps:$4 sm:$0xff]  }
 0x110   : > { %3642 = vmatprep.subr.bf16.mxu0 %v5332_v12  ;;  %3970 = vmatprep.subr.bf16.mxu1 %v5335_v14  ;;  %v5418_v12 = vld [vmem:[%s6145_s17 + $0x768] ss:$16 sps:$4 sm:$0xff]   ;;  %v5423_v14 = vld [vmem:[%s6145_s17 + $0x784] ss:$16 sps:$4 sm:$0xff]  }
 0x113   : > { %3643 = vmatpush1.bf16.msra.mxu0 %v5330_v15  ;;  %3971 = vmatpush1.bf16.msra.mxu1 %v5333_v17  ;;  %v5426_v15 = vld [vmem:[%s6145_s17 + $0x78c] ss:$16 sps:$4 sm:$0xff]   ;;  %v5421_v17 = vld [vmem:[%s6145_s17 + $0x780] ss:$16 sps:$4 sm:$0xff]  }
 0x114   : > { %3644 = vmatprep.subr.bf16.mxu0 %v5338_v52  ;;  %3972 = vmatprep.subr.bf16.mxu1 %v5341_v18  ;;  %v5424_v52 = vld [vmem:[%s6145_s17 + $0x788] ss:$16 sps:$4 sm:$0xff]   ;;  %v5429_v18 = vld [vmem:[%s6145_s17 + $0x7a4] ss:$16 sps:$4 sm:$0xff]  }
 0x117   : > { %3645 = vmatpush1.bf16.msra.mxu0 %v5336_v19  ;;  %3973 = vmatpush1.bf16.msra.mxu1 %v5339_v20  ;;  %v5432_v19 = vld [vmem:[%s6145_s17 + $0x7ac] ss:$16 sps:$4 sm:$0xff]   ;;  %v5427_v20 = vld [vmem:[%s6145_s17 + $0x7a0] ss:$16 sps:$4 sm:$0xff]  }
 0x118   : > { %3646 = vmatprep.subr.bf16.mxu0 %v5344_v21  ;;  %3974 = vmatprep.subr.bf16.mxu1 %v5347_v22  ;;  %v5430_v21 = vld [vmem:[%s6145_s17 + $0x7a8] ss:$16 sps:$4 sm:$0xff]   ;;  %v5435_v22 = vld [vmem:[%s6145_s17 + $0x7c4] ss:$16 sps:$4 sm:$0xff]  }
 0x11b   : > { %3647 = vmatpush1.bf16.msra.mxu0 %v5342_v23  ;;  %3975 = vmatpush1.bf16.msra.mxu1 %v5345_v24  ;;  %v5438_v23 = vld [vmem:[%s6145_s17 + $0x7cc] ss:$16 sps:$4 sm:$0xff]  }
 0x11c   : > { %3657 = vmatprep.subr.bf16.mxu0 %v5351_v25  ;;  %3985 = vmatprep.subr.bf16.mxu1 %v5354_v27  ;;  %v6455_v24 = vld [vmem:[%s6830_s0 + $0x8] sm:$0xff]  ;;  %v5433_v25 = vld [vmem:[%s6145_s17 + $0x7c0] ss:$16 sps:$4 sm:$0xff]  }
 0x11d   : > { %v5436_v27 = vld [vmem:[%s6145_s17 + $0x7c8] ss:$16 sps:$4 sm:$0xff]  }
 0x11e   : > { %3649 = vmatmul.mubr.bf16.vlgmr.msra.gmra.mrb[0].mxu0 %v6391_v28  ;;  %3977 = vmatmul.mubr.bf16.vlgmr.msra.gmra.mrb[0].mxu1 %v6391_v28 }
 0x11f   : > { %3658 = vmatpush1.bf16.msra.mxu0 %v5349_v13  ;;  %3986 = vmatpush1.bf16.msra.mxu1 %v5352_v29  ;;  %v5441_v13 = vld [vmem:[%s6145_s17 + $0x7e4] ss:$16 sps:$4 sm:$0xff]   ;;  %v5444_v29 = vld [vmem:[%s6145_s17 + $0x7ec] ss:$16 sps:$4 sm:$0xff]  }
 0x120   : > { %3659 = vmatprep.subr.bf16.mxu0 %v5357_v30  ;;  %3987 = vmatprep.subr.bf16.mxu1 %v5360_v31  ;;  %v6463_v30 = vrot.slane %v6455_v24, %v6209_v49  ;;  %v5439_v31 = vld [vmem:[%s6145_s17 + $0x7e0] ss:$16 sps:$4 sm:$0xff]  }
 0x121   : > { %3689 = vmatprep.mubr.bf16.mxu0 %v887_v32  ;;  %4017 = vmatprep.mubr.bf16.mxu1 %v887_v32  ;;  %v5442_v32 = vld [vmem:[%s6145_s17 + $0x7e8] ss:$16 sps:$4 sm:$0xff]  }
 0x123   : > { %3660 = vmatpush1.bf16.msra.mxu0 %v5355_v16  ;;  %3988 = vmatpush1.bf16.msra.mxu1 %v5358_v33  ;;  %v5447_v16 = vld [vmem:[%s6145_s17 + $0x804] ss:$16 sps:$4 sm:$0xff]   ;;  %v5450_v33 = vld [vmem:[%s6145_s17 + $0x80c] ss:$16 sps:$4 sm:$0xff]  }
 0x124   : > { %3661 = vmatprep.subr.bf16.mxu0 %v5363_v34  ;;  %3989 = vmatprep.subr.bf16.mxu1 %v5366_v35  ;;  %v903_v34 = vcombine.high %v6463_v30, %v6463_v30  ;;  %v885_v35 = vcombine.high %v6391_v28, %v6391_v28  ;;  %v5451_v28 = vld [vmem:[%s6145_s17 + $0x820] ss:$16 sps:$4 sm:$0xff]  }
 0x127   : > { %3662 = vmatpush1.bf16.msra.mxu0 %v5361_v26  ;;  %3990 = vmatpush1.bf16.msra.mxu1 %v5364_v36  ;;  %v5445_v26 = vld [vmem:[%s6145_s17 + $0x800] ss:$16 sps:$4 sm:$0xff]   ;;  %v5448_v36 = vld [vmem:[%s6145_s17 + $0x808] ss:$16 sps:$4 sm:$0xff]  }
 0x128   : > { %3663 = vmatprep.subr.bf16.mxu0 %v5369_v37  ;;  %3991 = vmatprep.subr.bf16.mxu1 %v5372_v39  ;;  %v5453_v37 = vld [vmem:[%s6145_s17 + $0x824] ss:$16 sps:$4 sm:$0xff]   ;;  %v5456_v39 = vld [vmem:[%s6145_s17 + $0x82c] ss:$16 sps:$4 sm:$0xff]  }
 0x12b   : > { %3664 = vmatpush1.bf16.msra.mxu0 %v5367_v40  ;;  %3992 = vmatpush1.bf16.msra.mxu1 %v5370_v41  ;;  %v6478_v40 = vrot.slane %v903_v34, %v6209_v49  ;;  %v5454_v41 = vld [vmem:[%s6145_s17 + $0x828] ss:$16 sps:$4 sm:$0xff]   ;;  %v5529_v34 = vld [vmem:[%s6145_s17 + $0x9c0] ss:$16 sps:$4 sm:$0xff]  }
 0x12c   : > { %3665 = vmatprep.subr.bf16.mxu0 %v5375_v42  ;;  %3993 = vmatprep.subr.bf16.mxu1 %v5378_v44  ;;  %v5459_v42 = vld [vmem:[%s6145_s17 + $0x844] ss:$16 sps:$4 sm:$0xff]   ;;  %v5462_v44 = vld [vmem:[%s6145_s17 + $0x84c] ss:$16 sps:$4 sm:$0xff]  }
 0x12f   : > { %3666 = vmatpush1.bf16.msra.mxu0 %v5373_v45  ;;  %3994 = vmatpush1.bf16.msra.mxu1 %v5376_v46  ;;  %v5457_v45 = vld [vmem:[%s6145_s17 + $0x840] ss:$16 sps:$4 sm:$0xff]   ;;  %v5460_v46 = vld [vmem:[%s6145_s17 + $0x848] ss:$16 sps:$4 sm:$0xff]  }
 0x130   : > { %3667 = vmatprep.subr.bf16.mxu0 %v5381_v47  ;;  %3995 = vmatprep.subr.bf16.mxu1 %v5384_v48  ;;  %v5465_v47 = vld [vmem:[%s6145_s17 + $0x864] ss:$16 sps:$4 sm:$0xff]   ;;  %v5468_v48 = vld [vmem:[%s6145_s17 + $0x86c] ss:$16 sps:$4 sm:$0xff]  }
 0x133   : > { %3668 = vmatpush1.bf16.msra.mxu0 %v5379_v50  ;;  %3996 = vmatpush1.bf16.msra.mxu1 %v5382_v51  ;;  %v5463_v50 = vld [vmem:[%s6145_s17 + $0x860] ss:$16 sps:$4 sm:$0xff]   ;;  %v5466_v51 = vld [vmem:[%s6145_s17 + $0x868] ss:$16 sps:$4 sm:$0xff]  }
 0x134   : > { %3669 = vmatprep.subr.bf16.mxu0 %v5387_v53  ;;  %3997 = vmatprep.subr.bf16.mxu1 %v5390_v54  ;;  %v5471_v53 = vld [vmem:[%s6145_s17 + $0x884] ss:$16 sps:$4 sm:$0xff]   ;;  %v5474_v54 = vld [vmem:[%s6145_s17 + $0x88c] ss:$16 sps:$4 sm:$0xff]  }
 0x137   : > { %3670 = vmatpush1.bf16.msra.mxu0 %v5385_v55  ;;  %3998 = vmatpush1.bf16.msra.mxu1 %v5388_v56  ;;  %v5469_v55 = vld [vmem:[%s6145_s17 + $0x880] ss:$16 sps:$4 sm:$0xff]   ;;  %v5472_v56 = vld [vmem:[%s6145_s17 + $0x888] ss:$16 sps:$4 sm:$0xff]  }
 0x138   : > { %3671 = vmatprep.subr.bf16.mxu0 %v5393_v57  ;;  %3999 = vmatprep.subr.bf16.mxu1 %v5396_v58  ;;  %v5477_v57 = vld [vmem:[%s6145_s17 + $0x8a4] ss:$16 sps:$4 sm:$0xff]   ;;  %v5480_v58 = vld [vmem:[%s6145_s17 + $0x8ac] ss:$16 sps:$4 sm:$0xff]  }
 0x13b   : > { %3672 = vmatpush1.bf16.msra.mxu0 %v5391_v59  ;;  %4000 = vmatpush1.bf16.msra.mxu1 %v5394_v60  ;;  %v5475_v59 = vld [vmem:[%s6145_s17 + $0x8a0] ss:$16 sps:$4 sm:$0xff]   ;;  %v5478_v60 = vld [vmem:[%s6145_s17 + $0x8a8] ss:$16 sps:$4 sm:$0xff]  }
 0x13c   : > { %3673 = vmatprep.subr.bf16.mxu0 %v5399_v61  ;;  %4001 = vmatprep.subr.bf16.mxu1 %v5402_v62  ;;  %v5483_v61 = vld [vmem:[%s6145_s17 + $0x8c4] ss:$16 sps:$4 sm:$0xff]   ;;  %v5486_v62 = vld [vmem:[%s6145_s17 + $0x8cc] ss:$16 sps:$4 sm:$0xff]  }
 0x13f   : > { %3674 = vmatpush1.bf16.msra.mxu0 %v5397_v63  ;;  %4002 = vmatpush1.bf16.msra.mxu1 %v5400_v0  ;;  %v5481_v63 = vld [vmem:[%s6145_s17 + $0x8c0] ss:$16 sps:$4 sm:$0xff]   ;;  %v5484_v0 = vld [vmem:[%s6145_s17 + $0x8c8] ss:$16 sps:$4 sm:$0xff]  }
 0x140   : > { %3675 = vmatprep.subr.bf16.mxu0 %v5405_v1  ;;  %4003 = vmatprep.subr.bf16.mxu1 %v5408_v2  ;;  %v5489_v1 = vld [vmem:[%s6145_s17 + $0x8e4] ss:$16 sps:$4 sm:$0xff]   ;;  %v5492_v2 = vld [vmem:[%s6145_s17 + $0x8ec] ss:$16 sps:$4 sm:$0xff]  }
 0x143   : > { %3676 = vmatpush1.bf16.msra.mxu0 %v5403_v3  ;;  %4004 = vmatpush1.bf16.msra.mxu1 %v5406_v4  ;;  %v5487_v3 = vld [vmem:[%s6145_s17 + $0x8e0] ss:$16 sps:$4 sm:$0xff]   ;;  %v5490_v4 = vld [vmem:[%s6145_s17 + $0x8e8] ss:$16 sps:$4 sm:$0xff]  }
 0x144   : > { %3677 = vmatprep.subr.bf16.mxu0 %v5411_v5  ;;  %4005 = vmatprep.subr.bf16.mxu1 %v5414_v6  ;;  %v5495_v5 = vld [vmem:[%s6145_s17 + $0x904] ss:$16 sps:$4 sm:$0xff]   ;;  %v5498_v6 = vld [vmem:[%s6145_s17 + $0x90c] ss:$16 sps:$4 sm:$0xff]  }
 0x147   : > { %3678 = vmatpush1.bf16.msra.mxu0 %v5409_v7  ;;  %4006 = vmatpush1.bf16.msra.mxu1 %v5412_v8  ;;  %v5493_v7 = vld [vmem:[%s6145_s17 + $0x900] ss:$16 sps:$4 sm:$0xff]   ;;  %v5496_v8 = vld [vmem:[%s6145_s17 + $0x908] ss:$16 sps:$4 sm:$0xff]  }
 0x148   : > { %3679 = vmatprep.subr.bf16.mxu0 %v5417_v9  ;;  %4007 = vmatprep.subr.bf16.mxu1 %v5420_v10  ;;  %v5501_v9 = vld [vmem:[%s6145_s17 + $0x924] ss:$16 sps:$4 sm:$0xff]   ;;  %v5504_v10 = vld [vmem:[%s6145_s17 + $0x92c] ss:$16 sps:$4 sm:$0xff]  }
 0x14b   : > { %3680 = vmatpush1.bf16.msra.mxu0 %v5415_v11  ;;  %4008 = vmatpush1.bf16.msra.mxu1 %v5418_v12  ;;  %v5499_v11 = vld [vmem:[%s6145_s17 + $0x920] ss:$16 sps:$4 sm:$0xff]   ;;  %v5502_v12 = vld [vmem:[%s6145_s17 + $0x928] ss:$16 sps:$4 sm:$0xff]  }
 0x14c   : > { %3681 = vmatprep.subr.bf16.mxu0 %v5423_v14  ;;  %4009 = vmatprep.subr.bf16.mxu1 %v5426_v15  ;;  %v5507_v14 = vld [vmem:[%s6145_s17 + $0x944] ss:$16 sps:$4 sm:$0xff]   ;;  %v5510_v15 = vld [vmem:[%s6145_s17 + $0x94c] ss:$16 sps:$4 sm:$0xff]  }
 0x14f   : > { %3682 = vmatpush1.bf16.msra.mxu0 %v5421_v17  ;;  %4010 = vmatpush1.bf16.msra.mxu1 %v5424_v52  ;;  %v5505_v17 = vld [vmem:[%s6145_s17 + $0x940] ss:$16 sps:$4 sm:$0xff]   ;;  %v5508_v52 = vld [vmem:[%s6145_s17 + $0x948] ss:$16 sps:$4 sm:$0xff]  }
 0x150   : > { %3683 = vmatprep.subr.bf16.mxu0 %v5429_v18  ;;  %4011 = vmatprep.subr.bf16.mxu1 %v5432_v19  ;;  %v5513_v18 = vld [vmem:[%s6145_s17 + $0x964] ss:$16 sps:$4 sm:$0xff]   ;;  %v5516_v19 = vld [vmem:[%s6145_s17 + $0x96c] ss:$16 sps:$4 sm:$0xff]  }
 0x153   : > { %3684 = vmatpush1.bf16.msra.mxu0 %v5427_v20  ;;  %4012 = vmatpush1.bf16.msra.mxu1 %v5430_v21  ;;  %v5511_v20 = vld [vmem:[%s6145_s17 + $0x960] ss:$16 sps:$4 sm:$0xff]   ;;  %v5514_v21 = vld [vmem:[%s6145_s17 + $0x968] ss:$16 sps:$4 sm:$0xff]  }
 0x154   : > { %3685 = vmatprep.subr.bf16.mxu0 %v5435_v22  ;;  %4013 = vmatprep.subr.bf16.mxu1 %v5438_v23  ;;  %v5519_v22 = vld [vmem:[%s6145_s17 + $0x984] ss:$16 sps:$4 sm:$0xff]   ;;  %v5522_v23 = vld [vmem:[%s6145_s17 + $0x98c] ss:$16 sps:$4 sm:$0xff]  }
 0x157   : > { %3686 = vmatpush1.bf16.msra.mxu0 %v5433_v25  ;;  %4014 = vmatpush1.bf16.msra.mxu1 %v5436_v27  ;;  %v5517_v25 = vld [vmem:[%s6145_s17 + $0x980] ss:$16 sps:$4 sm:$0xff]   ;;  %v5520_v27 = vld [vmem:[%s6145_s17 + $0x988] ss:$16 sps:$4 sm:$0xff]  }
 0x158   : > { %3687 = vmatprep.subr.bf16.mxu0 %v5441_v13  ;;  %4015 = vmatprep.subr.bf16.mxu1 %v5444_v29  ;;  %v5525_v13 = vld [vmem:[%s6145_s17 + $0x9a4] ss:$16 sps:$4 sm:$0xff]   ;;  %v5528_v29 = vld [vmem:[%s6145_s17 + $0x9ac] ss:$16 sps:$4 sm:$0xff]  }
 0x15b   : > { %3688 = vmatpush1.bf16.msra.mxu0 %v5439_v31  ;;  %4016 = vmatpush1.bf16.msra.mxu1 %v5442_v32  ;;  %v5523_v31 = vld [vmem:[%s6145_s17 + $0x9a0] ss:$16 sps:$4 sm:$0xff]   ;;  %v5526_v32 = vld [vmem:[%s6145_s17 + $0x9a8] ss:$16 sps:$4 sm:$0xff]  }
 0x15c   : > { %3698 = vmatprep.subr.bf16.mxu0 %v5447_v16  ;;  %4026 = vmatprep.subr.bf16.mxu1 %v5450_v33  ;;  %v5531_v16 = vld [vmem:[%s6145_s17 + $0x9c4] ss:$16 sps:$4 sm:$0xff]   ;;  %v5534_v33 = vld [vmem:[%s6145_s17 + $0x9cc] ss:$16 sps:$4 sm:$0xff]  }
 0x15e   : > { %3690 = vmatmul.mubr.bf16.vlgmr.msra.gmra.mrb[0].mxu0 %v885_v35  ;;  %4018 = vmatmul.mubr.bf16.vlgmr.msra.gmra.mrb[0].mxu1 %v885_v35  ;;  %v5532_v35 = vld [vmem:[%s6145_s17 + $0x9c8] ss:$16 sps:$4 sm:$0xff]  }
 0x15f   : > { %3699 = vmatpush1.bf16.msra.mxu0 %v5445_v26  ;;  %4027 = vmatpush1.bf16.msra.mxu1 %v5448_v36  ;;  %v5537_v26 = vld [vmem:[%s6145_s17 + $0x9e4] ss:$16 sps:$4 sm:$0xff]   ;;  %v5540_v36 = vld [vmem:[%s6145_s17 + $0x9ec] ss:$16 sps:$4 sm:$0xff]  }
 0x160   : > { %3700 = vmatprep.subr.bf16.mxu0 %v5453_v37  ;;  %4028 = vmatprep.subr.bf16.mxu1 %v5456_v39  ;;  %v5535_v37 = vld [vmem:[%s6145_s17 + $0x9e0] ss:$16 sps:$4 sm:$0xff]   ;;  %v5538_v39 = vld [vmem:[%s6145_s17 + $0x9e8] ss:$16 sps:$4 sm:$0xff]  }
 0x161   : > { %3730 = vmatprep.mubr.bf16.mxu0 %v6478_v40  ;;  %4058 = vmatprep.mubr.bf16.mxu1 %v6478_v40 }
 0x163   : > { %3701 = vmatpush1.bf16.msra.mxu0 %v5451_v28  ;;  %4029 = vmatpush1.bf16.msra.mxu1 %v5454_v41  ;;  %v5543_v28 = vld [vmem:[%s6145_s17 + $0xa04] ss:$16 sps:$4 sm:$0xff]   ;;  %v5546_v41 = vld [vmem:[%s6145_s17 + $0xa0c] ss:$16 sps:$4 sm:$0xff]  }
 0x164   : > { %3702 = vmatprep.subr.bf16.mxu0 %v5459_v42  ;;  %4030 = vmatprep.subr.bf16.mxu1 %v5462_v44  ;;  %v6544_v42 = vrot.slane %v6463_v30, %v6209_v49  ;;  %v5541_v44 = vld [vmem:[%s6145_s17 + $0xa00] ss:$16 sps:$4 sm:$0xff]  }
 0x165   : > { %v5547_v30 = vld [vmem:[%s6145_s17 + $0xa20] ss:$16 sps:$4 sm:$0xff]  }
 0x167   : > { %3703 = vmatpush1.bf16.msra.mxu0 %v5457_v45  ;;  %4031 = vmatpush1.bf16.msra.mxu1 %v5460_v46  ;;  %v5544_v45 = vld [vmem:[%s6145_s17 + $0xa08] ss:$16 sps:$4 sm:$0xff]   ;;  %v5549_v46 = vld [vmem:[%s6145_s17 + $0xa24] ss:$16 sps:$4 sm:$0xff]  }
 0x168   : > { %3704 = vmatprep.subr.bf16.mxu0 %v5465_v47  ;;  %4032 = vmatprep.subr.bf16.mxu1 %v5468_v48  ;;  %v5552_v47 = vld [vmem:[%s6145_s17 + $0xa2c] ss:$16 sps:$4 sm:$0xff]   ;;  %v935_v48 = vcombine.high %v6478_v40, %v6478_v40  ;;  %v5553_v40 = vld [vmem:[%s6145_s17 + $0xa40] ss:$16 sps:$4 sm:$0xff]  }
 0x16b   : > { %3705 = vmatpush1.bf16.msra.mxu0 %v5463_v50  ;;  %4033 = vmatpush1.bf16.msra.mxu1 %v5466_v51  ;;  %v5550_v50 = vld [vmem:[%s6145_s17 + $0xa28] ss:$16 sps:$4 sm:$0xff]   ;;  %v5555_v51 = vld [vmem:[%s6145_s17 + $0xa44] ss:$16 sps:$4 sm:$0xff]  }
 0x16c   : > { %3706 = vmatprep.subr.bf16.mxu0 %v5471_v53  ;;  %4034 = vmatprep.subr.bf16.mxu1 %v5474_v54  ;;  %v5558_v53 = vld [vmem:[%s6145_s17 + $0xa4c] ss:$16 sps:$4 sm:$0xff]   ;;  %v5556_v54 = vld [vmem:[%s6145_s17 + $0xa48] ss:$16 sps:$4 sm:$0xff]  }
 0x16f   : > { %3707 = vmatpush1.bf16.msra.mxu0 %v5469_v55  ;;  %4035 = vmatpush1.bf16.msra.mxu1 %v5472_v56  ;;  %v5561_v55 = vld [vmem:[%s6145_s17 + $0xa64] ss:$16 sps:$4 sm:$0xff]   ;;  %v5564_v56 = vld [vmem:[%s6145_s17 + $0xa6c] ss:$16 sps:$4 sm:$0xff]  }
 0x170   : > { %3708 = vmatprep.subr.bf16.mxu0 %v5477_v57  ;;  %4036 = vmatprep.subr.bf16.mxu1 %v5480_v58  ;;  %v5559_v57 = vld [vmem:[%s6145_s17 + $0xa60] ss:$16 sps:$4 sm:$0xff]   ;;  %v5562_v58 = vld [vmem:[%s6145_s17 + $0xa68] ss:$16 sps:$4 sm:$0xff]  }
 0x173   : > { %3709 = vmatpush1.bf16.msra.mxu0 %v5475_v59  ;;  %4037 = vmatpush1.bf16.msra.mxu1 %v5478_v60  ;;  %v5567_v59 = vld [vmem:[%s6145_s17 + $0xa84] ss:$16 sps:$4 sm:$0xff]   ;;  %v5570_v60 = vld [vmem:[%s6145_s17 + $0xa8c] ss:$16 sps:$4 sm:$0xff]  }
 0x174   : > { %3710 = vmatprep.subr.bf16.mxu0 %v5483_v61  ;;  %4038 = vmatprep.subr.bf16.mxu1 %v5486_v62  ;;  %v5565_v61 = vld [vmem:[%s6145_s17 + $0xa80] ss:$16 sps:$4 sm:$0xff]   ;;  %v5568_v62 = vld [vmem:[%s6145_s17 + $0xa88] ss:$16 sps:$4 sm:$0xff]  }
 0x177   : > { %3711 = vmatpush1.bf16.msra.mxu0 %v5481_v63  ;;  %4039 = vmatpush1.bf16.msra.mxu1 %v5484_v0  ;;  %v5573_v63 = vld [vmem:[%s6145_s17 + $0xaa4] ss:$16 sps:$4 sm:$0xff]   ;;  %v5576_v0 = vld [vmem:[%s6145_s17 + $0xaac] ss:$16 sps:$4 sm:$0xff]  }
 0x178   : > { %3712 = vmatprep.subr.bf16.mxu0 %v5489_v1  ;;  %4040 = vmatprep.subr.bf16.mxu1 %v5492_v2  ;;  %v5571_v1 = vld [vmem:[%s6145_s17 + $0xaa0] ss:$16 sps:$4 sm:$0xff]   ;;  %v5574_v2 = vld [vmem:[%s6145_s17 + $0xaa8] ss:$16 sps:$4 sm:$0xff]  }
 0x17b   : > { %3713 = vmatpush1.bf16.msra.mxu0 %v5487_v3  ;;  %4041 = vmatpush1.bf16.msra.mxu1 %v5490_v4  ;;  %v5579_v3 = vld [vmem:[%s6145_s17 + $0xac4] ss:$16 sps:$4 sm:$0xff]   ;;  %v5582_v4 = vld [vmem:[%s6145_s17 + $0xacc] ss:$16 sps:$4 sm:$0xff]  }
 0x17c   : > { %3714 = vmatprep.subr.bf16.mxu0 %v5495_v5  ;;  %4042 = vmatprep.subr.bf16.mxu1 %v5498_v6  ;;  %v5577_v5 = vld [vmem:[%s6145_s17 + $0xac0] ss:$16 sps:$4 sm:$0xff]   ;;  %v5580_v6 = vld [vmem:[%s6145_s17 + $0xac8] ss:$16 sps:$4 sm:$0xff]  }
 0x17f   : > { %3715 = vmatpush1.bf16.msra.mxu0 %v5493_v7  ;;  %4043 = vmatpush1.bf16.msra.mxu1 %v5496_v8  ;;  %v5585_v7 = vld [vmem:[%s6145_s17 + $0xae4] ss:$16 sps:$4 sm:$0xff]   ;;  %v5588_v8 = vld [vmem:[%s6145_s17 + $0xaec] ss:$16 sps:$4 sm:$0xff]  }
 0x180   : > { %3716 = vmatprep.subr.bf16.mxu0 %v5501_v9  ;;  %4044 = vmatprep.subr.bf16.mxu1 %v5504_v10  ;;  %v5583_v9 = vld [vmem:[%s6145_s17 + $0xae0] ss:$16 sps:$4 sm:$0xff]   ;;  %v5586_v10 = vld [vmem:[%s6145_s17 + $0xae8] ss:$16 sps:$4 sm:$0xff]  }
 0x183   : > { %3717 = vmatpush1.bf16.msra.mxu0 %v5499_v11  ;;  %4045 = vmatpush1.bf16.msra.mxu1 %v5502_v12  ;;  %v5591_v11 = vld [vmem:[%s6145_s17 + $0xb04] ss:$16 sps:$4 sm:$0xff]   ;;  %v5594_v12 = vld [vmem:[%s6145_s17 + $0xb0c] ss:$16 sps:$4 sm:$0xff]  }
 0x184   : > { %3718 = vmatprep.subr.bf16.mxu0 %v5507_v14  ;;  %4046 = vmatprep.subr.bf16.mxu1 %v5510_v15  ;;  %v5589_v14 = vld [vmem:[%s6145_s17 + $0xb00] ss:$16 sps:$4 sm:$0xff]   ;;  %v5592_v15 = vld [vmem:[%s6145_s17 + $0xb08] ss:$16 sps:$4 sm:$0xff]  }
 0x187   : > { %3719 = vmatpush1.bf16.msra.mxu0 %v5505_v17  ;;  %4047 = vmatpush1.bf16.msra.mxu1 %v5508_v52  ;;  %v5597_v17 = vld [vmem:[%s6145_s17 + $0xb24] ss:$16 sps:$4 sm:$0xff]   ;;  %v5600_v52 = vld [vmem:[%s6145_s17 + $0xb2c] ss:$16 sps:$4 sm:$0xff]  }
 0x188   : > { %3720 = vmatprep.subr.bf16.mxu0 %v5513_v18  ;;  %4048 = vmatprep.subr.bf16.mxu1 %v5516_v19  ;;  %v5595_v18 = vld [vmem:[%s6145_s17 + $0xb20] ss:$16 sps:$4 sm:$0xff]   ;;  %v5598_v19 = vld [vmem:[%s6145_s17 + $0xb28] ss:$16 sps:$4 sm:$0xff]  }
 0x18b   : > { %3721 = vmatpush1.bf16.msra.mxu0 %v5511_v20  ;;  %4049 = vmatpush1.bf16.msra.mxu1 %v5514_v21  ;;  %v5603_v20 = vld [vmem:[%s6145_s17 + $0xb44] ss:$16 sps:$4 sm:$0xff]   ;;  %v5606_v21 = vld [vmem:[%s6145_s17 + $0xb4c] ss:$16 sps:$4 sm:$0xff]  }
 0x18c   : > { %3722 = vmatprep.subr.bf16.mxu0 %v5519_v22  ;;  %4050 = vmatprep.subr.bf16.mxu1 %v5522_v23  ;;  %v5601_v22 = vld [vmem:[%s6145_s17 + $0xb40] ss:$16 sps:$4 sm:$0xff]   ;;  %v5604_v23 = vld [vmem:[%s6145_s17 + $0xb48] ss:$16 sps:$4 sm:$0xff]  }
 0x18f   : > { %3723 = vmatpush1.bf16.msra.mxu0 %v5517_v25  ;;  %4051 = vmatpush1.bf16.msra.mxu1 %v5520_v27  ;;  %v5609_v25 = vld [vmem:[%s6145_s17 + $0xb64] ss:$16 sps:$4 sm:$0xff]   ;;  %v5612_v27 = vld [vmem:[%s6145_s17 + $0xb6c] ss:$16 sps:$4 sm:$0xff]  }
 0x190   : > { %3724 = vmatprep.subr.bf16.mxu0 %v5525_v13  ;;  %4052 = vmatprep.subr.bf16.mxu1 %v5528_v29  ;;  %v5607_v13 = vld [vmem:[%s6145_s17 + $0xb60] ss:$16 sps:$4 sm:$0xff]   ;;  %v5610_v29 = vld [vmem:[%s6145_s17 + $0xb68] ss:$16 sps:$4 sm:$0xff]  }
 0x193   : > { %3725 = vmatpush1.bf16.msra.mxu0 %v5523_v31  ;;  %4053 = vmatpush1.bf16.msra.mxu1 %v5526_v32  ;;  %v5615_v31 = vld [vmem:[%s6145_s17 + $0xb84] ss:$16 sps:$4 sm:$0xff]   ;;  %v5618_v32 = vld [vmem:[%s6145_s17 + $0xb8c] ss:$16 sps:$4 sm:$0xff]  }
 0x194   : > { %3726 = vmatprep.subr.bf16.mxu0 %v5531_v16  ;;  %4054 = vmatprep.subr.bf16.mxu1 %v5534_v33  ;;  %v5613_v16 = vld [vmem:[%s6145_s17 + $0xb80] ss:$16 sps:$4 sm:$0xff]   ;;  %v5616_v33 = vld [vmem:[%s6145_s17 + $0xb88] ss:$16 sps:$4 sm:$0xff]  }
 0x197   : > { %3727 = vmatpush1.bf16.msra.mxu0 %v5529_v34  ;;  %4055 = vmatpush1.bf16.msra.mxu1 %v5532_v35  ;;  %v5621_v34 = vld [vmem:[%s6145_s17 + $0xba4] ss:$16 sps:$4 sm:$0xff]   ;;  %v5624_v35 = vld [vmem:[%s6145_s17 + $0xbac] ss:$16 sps:$4 sm:$0xff]  }
 0x198   : > { %3728 = vmatprep.subr.bf16.mxu0 %v5537_v26  ;;  %4056 = vmatprep.subr.bf16.mxu1 %v5540_v36  ;;  %v5619_v26 = vld [vmem:[%s6145_s17 + $0xba0] ss:$16 sps:$4 sm:$0xff]   ;;  %v5622_v36 = vld [vmem:[%s6145_s17 + $0xba8] ss:$16 sps:$4 sm:$0xff]  }
 0x19b   : > { %3729 = vmatpush1.bf16.msra.mxu0 %v5535_v37  ;;  %4057 = vmatpush1.bf16.msra.mxu1 %v5538_v39  ;;  %v5627_v37 = vld [vmem:[%s6145_s17 + $0xbc4] ss:$16 sps:$4 sm:$0xff]   ;;  %v5630_v39 = vld [vmem:[%s6145_s17 + $0xbcc] ss:$16 sps:$4 sm:$0xff]  }
 0x19c   : > { %3739 = vmatprep.subr.bf16.mxu0 %v5543_v28  ;;  %4067 = vmatprep.subr.bf16.mxu1 %v5546_v41  ;;  %v888_v28 = vcombine.high %v6455_v24, %v6455_v24  ;;  %v5625_v41 = vld [vmem:[%s6145_s17 + $0xbc0] ss:$16 sps:$4 sm:$0xff]  }
 0x19d   : > { %v5631_v24 = vld [vmem:[%s6145_s17 + $0xbe0] ss:$16 sps:$4 sm:$0xff]  }
 0x19e   : > { %3731 = vmatmul.mubr.bf16.vlgmr.msra.gmra.mrb[0].mxu0 %v6544_v42  ;;  %4059 = vmatmul.mubr.bf16.vlgmr.msra.gmra.mrb[0].mxu1 %v6544_v42 }
 0x19f   : > { %3740 = vmatpush1.bf16.msra.mxu0 %v5541_v44  ;;  %4068 = vmatpush1.bf16.msra.mxu1 %v5544_v45  ;;  %v5628_v44 = vld [vmem:[%s6145_s17 + $0xbc8] ss:$16 sps:$4 sm:$0xff]   ;;  %v5633_v45 = vld [vmem:[%s6145_s17 + $0xbe4] ss:$16 sps:$4 sm:$0xff]  }
 0x1a0   : > { %3741 = vmatprep.subr.bf16.mxu0 %v5549_v46  ;;  %4069 = vmatprep.subr.bf16.mxu1 %v5552_v47  ;;  %v5636_v46 = vld [vmem:[%s6145_s17 + $0xbec] ss:$16 sps:$4 sm:$0xff]   ;;  %v6613_v47 = vrot.slane %v888_v28, %v6209_v49  ;;  %v5709_v28 = vld [vmem:[%s6145_s17 + $0xd80] ss:$16 sps:$4 sm:$0xff]  }
 0x1a1   : > { %3771 = vmatprep.mubr.bf16.mxu0 %v935_v48  ;;  %4099 = vmatprep.mubr.bf16.mxu1 %v935_v48  ;;  %v5634_v48 = vld [vmem:[%s6145_s17 + $0xbe8] ss:$16 sps:$4 sm:$0xff]  }
 0x1a3   : > { %3742 = vmatpush1.bf16.msra.mxu0 %v5547_v30  ;;  %4070 = vmatpush1.bf16.msra.mxu1 %v5550_v50  ;;  %v5639_v30 = vld [vmem:[%s6145_s17 + $0xc04] ss:$16 sps:$4 sm:$0xff]   ;;  %v5642_v50 = vld [vmem:[%s6145_s17 + $0xc0c] ss:$16 sps:$4 sm:$0xff]  }
 0x1a4   : > { %3743 = vmatprep.subr.bf16.mxu0 %v5555_v51  ;;  %4071 = vmatprep.subr.bf16.mxu1 %v5558_v53  ;;  %v904_v51 = vcombine.high %v6613_v47, %v6613_v47  ;;  %v933_v53 = vcombine.high %v6544_v42, %v6544_v42  ;;  %v5643_v42 = vld [vmem:[%s6145_s17 + $0xc20] ss:$16 sps:$4 sm:$0xff]  }
 0x1a7   : > { %3744 = vmatpush1.bf16.msra.mxu0 %v5553_v40  ;;  %4072 = vmatpush1.bf16.msra.mxu1 %v5556_v54  ;;  %v5637_v40 = vld [vmem:[%s6145_s17 + $0xc00] ss:$16 sps:$4 sm:$0xff]   ;;  %v5640_v54 = vld [vmem:[%s6145_s17 + $0xc08] ss:$16 sps:$4 sm:$0xff]  }
 0x1a8   : > { %3745 = vmatprep.subr.bf16.mxu0 %v5561_v55  ;;  %4073 = vmatprep.subr.bf16.mxu1 %v5564_v56  ;;  %v5645_v55 = vld [vmem:[%s6145_s17 + $0xc24] ss:$16 sps:$4 sm:$0xff]   ;;  %v5648_v56 = vld [vmem:[%s6145_s17 + $0xc2c] ss:$16 sps:$4 sm:$0xff]  }
 0x1ab   : > { %3746 = vmatpush1.bf16.msra.mxu0 %v5559_v57  ;;  %4074 = vmatpush1.bf16.msra.mxu1 %v5562_v58  ;;  %v6628_v57 = vrot.slane %v904_v51, %v6209_v49  ;;  %v5646_v58 = vld [vmem:[%s6145_s17 + $0xc28] ss:$16 sps:$4 sm:$0xff]  }
 0x1ac   : > { %3747 = vmatprep.subr.bf16.mxu0 %v5567_v59  ;;  %4075 = vmatprep.subr.bf16.mxu1 %v5570_v60  ;;  %v5651_v59 = vld [vmem:[%s6145_s17 + $0xc44] ss:$16 sps:$4 sm:$0xff]   ;;  %v5654_v60 = vld [vmem:[%s6145_s17 + $0xc4c] ss:$16 sps:$4 sm:$0xff]   ;;  %v5724_v51 = vld [vmem:[%s6145_s17 + $0xdc8] ss:$16 sps:$4 sm:$0xff]  }
 0x1af   : > { %3748 = vmatpush1.bf16.msra.mxu0 %v5565_v61  ;;  %4076 = vmatpush1.bf16.msra.mxu1 %v5568_v62  ;;  %v5649_v61 = vld [vmem:[%s6145_s17 + $0xc40] ss:$16 sps:$4 sm:$0xff]   ;;  %v5652_v62 = vld [vmem:[%s6145_s17 + $0xc48] ss:$16 sps:$4 sm:$0xff]  }
 0x1b0   : > { %3749 = vmatprep.subr.bf16.mxu0 %v5573_v63  ;;  %4077 = vmatprep.subr.bf16.mxu1 %v5576_v0  ;;  %v5657_v63 = vld [vmem:[%s6145_s17 + $0xc64] ss:$16 sps:$4 sm:$0xff]   ;;  %v5660_v0 = vld [vmem:[%s6145_s17 + $0xc6c] ss:$16 sps:$4 sm:$0xff]  }
 0x1b3   : > { %3750 = vmatpush1.bf16.msra.mxu0 %v5571_v1  ;;  %4078 = vmatpush1.bf16.msra.mxu1 %v5574_v2  ;;  %v5655_v1 = vld [vmem:[%s6145_s17 + $0xc60] ss:$16 sps:$4 sm:$0xff]   ;;  %v5658_v2 = vld [vmem:[%s6145_s17 + $0xc68] ss:$16 sps:$4 sm:$0xff]  }
 0x1b4   : > { %3751 = vmatprep.subr.bf16.mxu0 %v5579_v3  ;;  %4079 = vmatprep.subr.bf16.mxu1 %v5582_v4  ;;  %v5663_v3 = vld [vmem:[%s6145_s17 + $0xc84] ss:$16 sps:$4 sm:$0xff]   ;;  %v5666_v4 = vld [vmem:[%s6145_s17 + $0xc8c] ss:$16 sps:$4 sm:$0xff]  }
 0x1b7   : > { %3752 = vmatpush1.bf16.msra.mxu0 %v5577_v5  ;;  %4080 = vmatpush1.bf16.msra.mxu1 %v5580_v6  ;;  %v5661_v5 = vld [vmem:[%s6145_s17 + $0xc80] ss:$16 sps:$4 sm:$0xff]   ;;  %v5664_v6 = vld [vmem:[%s6145_s17 + $0xc88] ss:$16 sps:$4 sm:$0xff]  }
 0x1b8   : > { %3753 = vmatprep.subr.bf16.mxu0 %v5585_v7  ;;  %4081 = vmatprep.subr.bf16.mxu1 %v5588_v8  ;;  %v5669_v7 = vld [vmem:[%s6145_s17 + $0xca4] ss:$16 sps:$4 sm:$0xff]   ;;  %v5672_v8 = vld [vmem:[%s6145_s17 + $0xcac] ss:$16 sps:$4 sm:$0xff]  }
 0x1bb   : > { %3754 = vmatpush1.bf16.msra.mxu0 %v5583_v9  ;;  %4082 = vmatpush1.bf16.msra.mxu1 %v5586_v10  ;;  %v5667_v9 = vld [vmem:[%s6145_s17 + $0xca0] ss:$16 sps:$4 sm:$0xff]   ;;  %v5670_v10 = vld [vmem:[%s6145_s17 + $0xca8] ss:$16 sps:$4 sm:$0xff]  }
 0x1bc   : > { %3755 = vmatprep.subr.bf16.mxu0 %v5591_v11  ;;  %4083 = vmatprep.subr.bf16.mxu1 %v5594_v12  ;;  %v5675_v11 = vld [vmem:[%s6145_s17 + $0xcc4] ss:$16 sps:$4 sm:$0xff]   ;;  %v5678_v12 = vld [vmem:[%s6145_s17 + $0xccc] ss:$16 sps:$4 sm:$0xff]  }
 0x1bf   : > { %3756 = vmatpush1.bf16.msra.mxu0 %v5589_v14  ;;  %4084 = vmatpush1.bf16.msra.mxu1 %v5592_v15  ;;  %v5673_v14 = vld [vmem:[%s6145_s17 + $0xcc0] ss:$16 sps:$4 sm:$0xff]   ;;  %v5676_v15 = vld [vmem:[%s6145_s17 + $0xcc8] ss:$16 sps:$4 sm:$0xff]  }
 0x1c0   : > { %3757 = vmatprep.subr.bf16.mxu0 %v5597_v17  ;;  %4085 = vmatprep.subr.bf16.mxu1 %v5600_v52  ;;  %v5681_v17 = vld [vmem:[%s6145_s17 + $0xce4] ss:$16 sps:$4 sm:$0xff]   ;;  %v5684_v52 = vld [vmem:[%s6145_s17 + $0xcec] ss:$16 sps:$4 sm:$0xff]  }
 0x1c3   : > { %3758 = vmatpush1.bf16.msra.mxu0 %v5595_v18  ;;  %4086 = vmatpush1.bf16.msra.mxu1 %v5598_v19  ;;  %v5679_v18 = vld [vmem:[%s6145_s17 + $0xce0] ss:$16 sps:$4 sm:$0xff]   ;;  %v5682_v19 = vld [vmem:[%s6145_s17 + $0xce8] ss:$16 sps:$4 sm:$0xff]  }
 0x1c4   : > { %3759 = vmatprep.subr.bf16.mxu0 %v5603_v20  ;;  %4087 = vmatprep.subr.bf16.mxu1 %v5606_v21  ;;  %v5687_v20 = vld [vmem:[%s6145_s17 + $0xd04] ss:$16 sps:$4 sm:$0xff]   ;;  %v5690_v21 = vld [vmem:[%s6145_s17 + $0xd0c] ss:$16 sps:$4 sm:$0xff]  }
 0x1c7   : > { %3760 = vmatpush1.bf16.msra.mxu0 %v5601_v22  ;;  %4088 = vmatpush1.bf16.msra.mxu1 %v5604_v23  ;;  %v5685_v22 = vld [vmem:[%s6145_s17 + $0xd00] ss:$16 sps:$4 sm:$0xff]   ;;  %v5688_v23 = vld [vmem:[%s6145_s17 + $0xd08] ss:$16 sps:$4 sm:$0xff]  }
 0x1c8   : > { %3761 = vmatprep.subr.bf16.mxu0 %v5609_v25  ;;  %4089 = vmatprep.subr.bf16.mxu1 %v5612_v27  ;;  %v5693_v25 = vld [vmem:[%s6145_s17 + $0xd24] ss:$16 sps:$4 sm:$0xff]   ;;  %v5696_v27 = vld [vmem:[%s6145_s17 + $0xd2c] ss:$16 sps:$4 sm:$0xff]  }
 0x1cb   : > { %3762 = vmatpush1.bf16.msra.mxu0 %v5607_v13  ;;  %4090 = vmatpush1.bf16.msra.mxu1 %v5610_v29  ;;  %v5691_v13 = vld [vmem:[%s6145_s17 + $0xd20] ss:$16 sps:$4 sm:$0xff]   ;;  %v5694_v29 = vld [vmem:[%s6145_s17 + $0xd28] ss:$16 sps:$4 sm:$0xff]  }
 0x1cc   : > { %3763 = vmatprep.subr.bf16.mxu0 %v5615_v31  ;;  %4091 = vmatprep.subr.bf16.mxu1 %v5618_v32  ;;  %v5699_v31 = vld [vmem:[%s6145_s17 + $0xd44] ss:$16 sps:$4 sm:$0xff]   ;;  %v5702_v32 = vld [vmem:[%s6145_s17 + $0xd4c] ss:$16 sps:$4 sm:$0xff]  }
 0x1cf   : > { %3764 = vmatpush1.bf16.msra.mxu0 %v5613_v16  ;;  %4092 = vmatpush1.bf16.msra.mxu1 %v5616_v33  ;;  %v5697_v16 = vld [vmem:[%s6145_s17 + $0xd40] ss:$16 sps:$4 sm:$0xff]   ;;  %v5700_v33 = vld [vmem:[%s6145_s17 + $0xd48] ss:$16 sps:$4 sm:$0xff]  }
 0x1d0   : > { %3765 = vmatprep.subr.bf16.mxu0 %v5621_v34  ;;  %4093 = vmatprep.subr.bf16.mxu1 %v5624_v35  ;;  %v5705_v34 = vld [vmem:[%s6145_s17 + $0xd64] ss:$16 sps:$4 sm:$0xff]   ;;  %v5708_v35 = vld [vmem:[%s6145_s17 + $0xd6c] ss:$16 sps:$4 sm:$0xff]  }
 0x1d3   : > { %3766 = vmatpush1.bf16.msra.mxu0 %v5619_v26  ;;  %4094 = vmatpush1.bf16.msra.mxu1 %v5622_v36  ;;  %v5703_v26 = vld [vmem:[%s6145_s17 + $0xd60] ss:$16 sps:$4 sm:$0xff]   ;;  %v5706_v36 = vld [vmem:[%s6145_s17 + $0xd68] ss:$16 sps:$4 sm:$0xff]  }
 0x1d4   : > { %3767 = vmatprep.subr.bf16.mxu0 %v5627_v37  ;;  %4095 = vmatprep.subr.bf16.mxu1 %v5630_v39  ;;  %v5711_v37 = vld [vmem:[%s6145_s17 + $0xd84] ss:$16 sps:$4 sm:$0xff]   ;;  %v5714_v39 = vld [vmem:[%s6145_s17 + $0xd8c] ss:$16 sps:$4 sm:$0xff]  }
 0x1d7   : > { %3768 = vmatpush1.bf16.msra.mxu0 %v5625_v41  ;;  %4096 = vmatpush1.bf16.msra.mxu1 %v5628_v44  ;;  %v5712_v41 = vld [vmem:[%s6145_s17 + $0xd88] ss:$16 sps:$4 sm:$0xff]   ;;  %v5717_v44 = vld [vmem:[%s6145_s17 + $0xda4] ss:$16 sps:$4 sm:$0xff]  }
 0x1d8   : > { %3769 = vmatprep.subr.bf16.mxu0 %v5633_v45  ;;  %4097 = vmatprep.subr.bf16.mxu1 %v5636_v46  ;;  %v5720_v45 = vld [vmem:[%s6145_s17 + $0xdac] ss:$16 sps:$4 sm:$0xff]   ;;  %v5715_v46 = vld [vmem:[%s6145_s17 + $0xda0] ss:$16 sps:$4 sm:$0xff]  }
 0x1db   : > { %3770 = vmatpush1.bf16.msra.mxu0 %v5631_v24  ;;  %4098 = vmatpush1.bf16.msra.mxu1 %v5634_v48  ;;  %v5718_v24 = vld [vmem:[%s6145_s17 + $0xda8] ss:$16 sps:$4 sm:$0xff]   ;;  %v5723_v48 = vld [vmem:[%s6145_s17 + $0xdc4] ss:$16 sps:$4 sm:$0xff]  }
 0x1dc   : > { %3780 = vmatprep.subr.bf16.mxu0 %v5639_v30  ;;  %4108 = vmatprep.subr.bf16.mxu1 %v5642_v50  ;;  %v5726_v30 = vld [vmem:[%s6145_s17 + $0xdcc] ss:$16 sps:$4 sm:$0xff]   ;;  %v5721_v50 = vld [vmem:[%s6145_s17 + $0xdc0] ss:$16 sps:$4 sm:$0xff]  }
 0x1de   : > { %3772 = vmatmul.mubr.bf16.vlgmr.msra.gmra.mrb[0].mxu0 %v933_v53  ;;  %4100 = vmatmul.mubr.bf16.vlgmr.msra.gmra.mrb[0].mxu1 %v933_v53  ;;  %v5729_v53 = vld [vmem:[%s6145_s17 + $0xde4] ss:$16 sps:$4 sm:$0xff]  }
 0x1df   : > { %3781 = vmatpush1.bf16.msra.mxu0 %v5637_v40  ;;  %4109 = vmatpush1.bf16.msra.mxu1 %v5640_v54  ;;  %v5732_v40 = vld [vmem:[%s6145_s17 + $0xdec] ss:$16 sps:$4 sm:$0xff]   ;;  %v5727_v54 = vld [vmem:[%s6145_s17 + $0xde0] ss:$16 sps:$4 sm:$0xff]  }
 0x1e0   : > { %3782 = vmatprep.subr.bf16.mxu0 %v5645_v55  ;;  %4110 = vmatprep.subr.bf16.mxu1 %v5648_v56  ;;  %v5730_v55 = vld [vmem:[%s6145_s17 + $0xde8] ss:$16 sps:$4 sm:$0xff]   ;;  %v5736_v56 = vld [vmem:[%s6145_s17 + $0xe04] ss:$16 sps:$4 sm:$0xff]  }
 0x1e1   : > { %3812 = vmatprep.mubr.bf16.mxu0 %v6628_v57  ;;  %4140 = vmatprep.mubr.bf16.mxu1 %v6628_v57 }
 0x1e3   : > { %3783 = vmatpush1.bf16.msra.mxu0 %v5643_v42  ;;  %4111 = vmatpush1.bf16.msra.mxu1 %v5646_v58  ;;  %v5739_v42 = vld [vmem:[%s6145_s17 + $0xe0c] ss:$16 sps:$4 sm:$0xff]   ;;  %v6694_v58 = vrot.slane %v6613_v47, %v6209_v49  ;;  %v5740_v47 = vld [vmem:[%s6145_s17 + $0xe20] ss:$16 sps:$4 sm:$0xff]  }
 0x1e4   : > { %3784 = vmatprep.subr.bf16.mxu0 %v5651_v59  ;;  %4112 = vmatprep.subr.bf16.mxu1 %v5654_v60  ;;  %v5734_v59 = vld [vmem:[%s6145_s17 + $0xe00] ss:$16 sps:$4 sm:$0xff]   ;;  %v5737_v60 = vld [vmem:[%s6145_s17 + $0xe08] ss:$16 sps:$4 sm:$0xff]  }
 0x1e7   : > { %3785 = vmatpush1.bf16.msra.mxu0 %v5649_v61  ;;  %4113 = vmatpush1.bf16.msra.mxu1 %v5652_v62  ;;  %v5742_v61 = vld [vmem:[%s6145_s17 + $0xe24] ss:$16 sps:$4 sm:$0xff]   ;;  %v5745_v62 = vld [vmem:[%s6145_s17 + $0xe2c] ss:$16 sps:$4 sm:$0xff]  }
 0x1e8   : > { %3786 = vmatprep.subr.bf16.mxu0 %v5657_v63  ;;  %4114 = vmatprep.subr.bf16.mxu1 %v5660_v0  ;;  %v936_v63 = vcombine.high %v6628_v57, %v6628_v57  ;;  %v5743_v0 = vld [vmem:[%s6145_s17 + $0xe28] ss:$16 sps:$4 sm:$0xff]   ;;  %v5746_v57 = vld [vmem:[%s6145_s17 + $0xe40] ss:$16 sps:$4 sm:$0xff]  }
 0x1eb   : > { %3787 = vmatpush1.bf16.msra.mxu0 %v5655_v1  ;;  %4115 = vmatpush1.bf16.msra.mxu1 %v5658_v2  ;;  %v5748_v1 = vld [vmem:[%s6145_s17 + $0xe44] ss:$16 sps:$4 sm:$0xff]   ;;  %v5751_v2 = vld [vmem:[%s6145_s17 + $0xe4c] ss:$16 sps:$4 sm:$0xff]  }
 0x1ec   : > { %3788 = vmatprep.subr.bf16.mxu0 %v5663_v3  ;;  %4116 = vmatprep.subr.bf16.mxu1 %v5666_v4  ;;  %v5749_v3 = vld [vmem:[%s6145_s17 + $0xe48] ss:$16 sps:$4 sm:$0xff]   ;;  %v5754_v4 = vld [vmem:[%s6145_s17 + $0xe64] ss:$16 sps:$4 sm:$0xff]  }
 0x1ef   : > { %3789 = vmatpush1.bf16.msra.mxu0 %v5661_v5  ;;  %4117 = vmatpush1.bf16.msra.mxu1 %v5664_v6  ;;  %v5757_v5 = vld [vmem:[%s6145_s17 + $0xe6c] ss:$16 sps:$4 sm:$0xff]   ;;  %v5752_v6 = vld [vmem:[%s6145_s17 + $0xe60] ss:$16 sps:$4 sm:$0xff]  }
 0x1f0   : > { %3790 = vmatprep.subr.bf16.mxu0 %v5669_v7  ;;  %4118 = vmatprep.subr.bf16.mxu1 %v5672_v8  ;;  %v5755_v7 = vld [vmem:[%s6145_s17 + $0xe68] ss:$16 sps:$4 sm:$0xff]   ;;  %v5760_v8 = vld [vmem:[%s6145_s17 + $0xe84] ss:$16 sps:$4 sm:$0xff]  }
 0x1f3   : > { %3791 = vmatpush1.bf16.msra.mxu0 %v5667_v9  ;;  %4119 = vmatpush1.bf16.msra.mxu1 %v5670_v10  ;;  %v5763_v9 = vld [vmem:[%s6145_s17 + $0xe8c] ss:$16 sps:$4 sm:$0xff]   ;;  %v5758_v10 = vld [vmem:[%s6145_s17 + $0xe80] ss:$16 sps:$4 sm:$0xff]  }
 0x1f4   : > { %3792 = vmatprep.subr.bf16.mxu0 %v5675_v11  ;;  %4120 = vmatprep.subr.bf16.mxu1 %v5678_v12  ;;  %v5761_v11 = vld [vmem:[%s6145_s17 + $0xe88] ss:$16 sps:$4 sm:$0xff]   ;;  %v5766_v12 = vld [vmem:[%s6145_s17 + $0xea4] ss:$16 sps:$4 sm:$0xff]  }
 0x1f7   : > { %3793 = vmatpush1.bf16.msra.mxu0 %v5673_v14  ;;  %4121 = vmatpush1.bf16.msra.mxu1 %v5676_v15  ;;  %v5769_v14 = vld [vmem:[%s6145_s17 + $0xeac] ss:$16 sps:$4 sm:$0xff]   ;;  %v5764_v15 = vld [vmem:[%s6145_s17 + $0xea0] ss:$16 sps:$4 sm:$0xff]  }
 0x1f8   : > { %3794 = vmatprep.subr.bf16.mxu0 %v5681_v17  ;;  %4122 = vmatprep.subr.bf16.mxu1 %v5684_v52  ;;  %v5767_v17 = vld [vmem:[%s6145_s17 + $0xea8] ss:$16 sps:$4 sm:$0xff]   ;;  %v5772_v52 = vld [vmem:[%s6145_s17 + $0xec4] ss:$16 sps:$4 sm:$0xff]  }
 0x1fb   : > { %3795 = vmatpush1.bf16.msra.mxu0 %v5679_v18  ;;  %4123 = vmatpush1.bf16.msra.mxu1 %v5682_v19  ;;  %v5775_v18 = vld [vmem:[%s6145_s17 + $0xecc] ss:$16 sps:$4 sm:$0xff]   ;;  %v5770_v19 = vld [vmem:[%s6145_s17 + $0xec0] ss:$16 sps:$4 sm:$0xff]  }
 0x1fc   : > { %3796 = vmatprep.subr.bf16.mxu0 %v5687_v20  ;;  %4124 = vmatprep.subr.bf16.mxu1 %v5690_v21  ;;  %v5773_v20 = vld [vmem:[%s6145_s17 + $0xec8] ss:$16 sps:$4 sm:$0xff]   ;;  %v5778_v21 = vld [vmem:[%s6145_s17 + $0xee4] ss:$16 sps:$4 sm:$0xff]  }
 0x1ff   : > { %3797 = vmatpush1.bf16.msra.mxu0 %v5685_v22  ;;  %4125 = vmatpush1.bf16.msra.mxu1 %v5688_v23  ;;  %v5781_v22 = vld [vmem:[%s6145_s17 + $0xeec] ss:$16 sps:$4 sm:$0xff]   ;;  %v5776_v23 = vld [vmem:[%s6145_s17 + $0xee0] ss:$16 sps:$4 sm:$0xff]  }
 0x200   : > { %3798 = vmatprep.subr.bf16.mxu0 %v5693_v25  ;;  %4126 = vmatprep.subr.bf16.mxu1 %v5696_v27  ;;  %v5779_v25 = vld [vmem:[%s6145_s17 + $0xee8] ss:$16 sps:$4 sm:$0xff]   ;;  %v5784_v27 = vld [vmem:[%s6145_s17 + $0xf04] ss:$16 sps:$4 sm:$0xff]  }
 0x203   : > { %3799 = vmatpush1.bf16.msra.mxu0 %v5691_v13  ;;  %4127 = vmatpush1.bf16.msra.mxu1 %v5694_v29  ;;  %v5787_v13 = vld [vmem:[%s6145_s17 + $0xf0c] ss:$16 sps:$4 sm:$0xff]   ;;  %v5782_v29 = vld [vmem:[%s6145_s17 + $0xf00] ss:$16 sps:$4 sm:$0xff]  }
 0x204   : > { %3800 = vmatprep.subr.bf16.mxu0 %v5699_v31  ;;  %4128 = vmatprep.subr.bf16.mxu1 %v5702_v32  ;;  %v5785_v31 = vld [vmem:[%s6145_s17 + $0xf08] ss:$16 sps:$4 sm:$0xff]   ;;  %v5790_v32 = vld [vmem:[%s6145_s17 + $0xf24] ss:$16 sps:$4 sm:$0xff]  }
 0x207   : > { %3801 = vmatpush1.bf16.msra.mxu0 %v5697_v16  ;;  %4129 = vmatpush1.bf16.msra.mxu1 %v5700_v33  ;;  %v5793_v16 = vld [vmem:[%s6145_s17 + $0xf2c] ss:$16 sps:$4 sm:$0xff]   ;;  %v5788_v33 = vld [vmem:[%s6145_s17 + $0xf20] ss:$16 sps:$4 sm:$0xff]  }
 0x208   : > { %3802 = vmatprep.subr.bf16.mxu0 %v5705_v34  ;;  %4130 = vmatprep.subr.bf16.mxu1 %v5708_v35  ;;  %v5791_v34 = vld [vmem:[%s6145_s17 + $0xf28] ss:$16 sps:$4 sm:$0xff]   ;;  %v5796_v35 = vld [vmem:[%s6145_s17 + $0xf44] ss:$16 sps:$4 sm:$0xff]  }
 0x20b   : > { %3803 = vmatpush1.bf16.msra.mxu0 %v5703_v26  ;;  %4131 = vmatpush1.bf16.msra.mxu1 %v5706_v36  ;;  %v5799_v26 = vld [vmem:[%s6145_s17 + $0xf4c] ss:$16 sps:$4 sm:$0xff]   ;;  %v5794_v36 = vld [vmem:[%s6145_s17 + $0xf40] ss:$16 sps:$4 sm:$0xff]  }
 0x20c   : > { %3804 = vmatprep.subr.bf16.mxu0 %v5711_v37  ;;  %4132 = vmatprep.subr.bf16.mxu1 %v5714_v39  ;;  %v5797_v37 = vld [vmem:[%s6145_s17 + $0xf48] ss:$16 sps:$4 sm:$0xff]   ;;  %v5802_v39 = vld [vmem:[%s6145_s17 + $0xf64] ss:$16 sps:$4 sm:$0xff]  }
 0x20f   : > { %3805 = vmatpush1.bf16.msra.mxu0 %v5709_v28  ;;  %4133 = vmatpush1.bf16.msra.mxu1 %v5712_v41  ;;  %v5805_v28 = vld [vmem:[%s6145_s17 + $0xf6c] ss:$16 sps:$4 sm:$0xff]   ;;  %v5800_v41 = vld [vmem:[%s6145_s17 + $0xf60] ss:$16 sps:$4 sm:$0xff]  }
 0x210   : > { %3806 = vmatprep.subr.bf16.mxu0 %v5717_v44  ;;  %4134 = vmatprep.subr.bf16.mxu1 %v5720_v45  ;;  %v5803_v44 = vld [vmem:[%s6145_s17 + $0xf68] ss:$16 sps:$4 sm:$0xff]   ;;  %v5808_v45 = vld [vmem:[%s6145_s17 + $0xf84] ss:$16 sps:$4 sm:$0xff]  }
 0x213   : > { %3807 = vmatpush1.bf16.msra.mxu0 %v5715_v46  ;;  %4135 = vmatpush1.bf16.msra.mxu1 %v5718_v24  ;;  %v5811_v46 = vld [vmem:[%s6145_s17 + $0xf8c] ss:$16 sps:$4 sm:$0xff]   ;;  %v5806_v24 = vld [vmem:[%s6145_s17 + $0xf80] ss:$16 sps:$4 sm:$0xff]  }
 0x214   : > { %3808 = vmatprep.subr.bf16.mxu0 %v5723_v48  ;;  %4136 = vmatprep.subr.bf16.mxu1 %v5726_v30  ;;  %v5809_v48 = vld [vmem:[%s6145_s17 + $0xf88] ss:$16 sps:$4 sm:$0xff]   ;;  %v5814_v30 = vld [vmem:[%s6145_s17 + $0xfa4] ss:$16 sps:$4 sm:$0xff]  }
 0x217   : > { %3809 = vmatpush1.bf16.msra.mxu0 %v5721_v50  ;;  %4137 = vmatpush1.bf16.msra.mxu1 %v5724_v51  ;;  %v5817_v50 = vld [vmem:[%s6145_s17 + $0xfac] ss:$16 sps:$4 sm:$0xff]   ;;  %v5812_v51 = vld [vmem:[%s6145_s17 + $0xfa0] ss:$16 sps:$4 sm:$0xff]  }
 0x218   : > { %3810 = vmatprep.subr.bf16.mxu0 %v5729_v53  ;;  %4138 = vmatprep.subr.bf16.mxu1 %v5732_v40  ;;  %v5815_v53 = vld [vmem:[%s6145_s17 + $0xfa8] ss:$16 sps:$4 sm:$0xff]   ;;  %v5820_v40 = vld [vmem:[%s6145_s17 + $0xfc4] ss:$16 sps:$4 sm:$0xff]  }
 0x21b   : > { %3811 = vmatpush1.bf16.msra.mxu0 %v5727_v54  ;;  %4139 = vmatpush1.bf16.msra.mxu1 %v5730_v55  ;;  %v5823_v54 = vld [vmem:[%s6145_s17 + $0xfcc] ss:$16 sps:$4 sm:$0xff]   ;;  %v5818_v55 = vld [vmem:[%s6145_s17 + $0xfc0] ss:$16 sps:$4 sm:$0xff]  }
 0x21c   : > { %3821 = vmatprep.subr.bf16.mxu0 %v5736_v56  ;;  %4149 = vmatprep.subr.bf16.mxu1 %v5739_v42  ;;  %v5821_v56 = vld [vmem:[%s6145_s17 + $0xfc8] ss:$16 sps:$4 sm:$0xff]   ;;  %v5826_v42 = vld [vmem:[%s6145_s17 + $0xfe4] ss:$16 sps:$4 sm:$0xff]  }
 0x21e   : > { %3813 = vmatmul.mubr.bf16.vlgmr.msra.gmra.mrb[0].mxu0 %v6694_v58  ;;  %4141 = vmatmul.mubr.bf16.vlgmr.msra.gmra.mrb[0].mxu1 %v6694_v58 }
 0x21f   : > { %3822 = vmatpush1.bf16.msra.mxu0 %v5734_v59  ;;  %4150 = vmatpush1.bf16.msra.mxu1 %v5737_v60  ;;  %v5829_v59 = vld [vmem:[%s6145_s17 + $0xfec] ss:$16 sps:$4 sm:$0xff]   ;;  %v5824_v60 = vld [vmem:[%s6145_s17 + $0xfe0] ss:$16 sps:$4 sm:$0xff]  }
 0x220   : > { %3823 = vmatprep.subr.bf16.mxu0 %v5742_v61  ;;  %4151 = vmatprep.subr.bf16.mxu1 %v5745_v62  ;;  %v5827_v61 = vld [vmem:[%s6145_s17 + $0xfe8] ss:$16 sps:$4 sm:$0xff]   ;;  %v934_v62 = vcombine.high %v6694_v58, %v6694_v58  ;;  %s308_s17 = scalar_lea.vmem [#allocation7], %s4421_s1  ;;  %s5968_s1 = smov [#allocation7]  }
 0x221   : > { %3853 = vmatprep.mubr.bf16.mxu0 %v936_v63  ;;  %4181 = vmatprep.mubr.bf16.mxu1 %v936_v63  ;;  %v3516_v63 = vsub.s32 0, %v6201_v43  ;;  %s4299_s15 = sshll.u32 %s308_s17, 4  ;;  %s5894_s23 = sshll.u32 %s5968_s1, 4  ;;  %s6788_s15 = int_to_ptr.vmem [resolvable:$true] %s4299_s15  ;;  %s5895_s23 = int_to_ptr.vmem [resolvable:$false] %s5894_s23 }
 0x222   : > { %s5890_s12 = scalar_lea.vmem %s6788_s15, 64  ;;  %s5896_s25 = scalar_lea.vmem %s5895_s23, 128 }
 0x223   : > { %3824 = vmatpush1.bf16.msra.mxu0 %v5740_v47  ;;  %4152 = vmatpush1.bf16.msra.mxu1 %v5743_v0  ;;  %v3524_v47 = vsub.s32 2, %v6201_v43  ;;  %v836_v0 = vld [vmem:[%s6155_s8] sm:$0xf]  ;;  %p5891_p2 = scmp.ne.s32.totalorder %s6788_s15, %s5890_s12  ;;  %p5897_p8 = scmp.lt.s32.totalorder %s6788_s15, %s5895_s23 }
 0x224   : > { %3825 = vmatprep.subr.bf16.mxu0 %v5748_v1  ;;  %4153 = vmatprep.subr.bf16.mxu1 %v5751_v2  ;;  %v3520_v1 = vsub.s32 1, %v6201_v43  ;;  %v3528_v2 = vsub.s32 3, %v6201_v43  ;;  %v3517_v58 = vrot.slane %v836_v0, %v3516_v63  ;;  %v4224_v43 = vld [vmem:[%s319_s14] sm:$0xf]  ;;  %p5898_p9 = scmp.lt.s32.totalorder %s5896_s25, %s5890_s12 }
 0x225   : > { %p5892_p5 = pnand %p5891_p2, %p6849_p12 }
 0x226   : > { %p5899_p11 = por %p5898_p9, %p5897_p8 }
 0x227   : > { %3826 = vmatpush1.bf16.msra.mxu0 %v5746_v57  ;;  %4154 = vmatpush1.bf16.msra.mxu1 %v5749_v3  ;;  %v3525_v57 = vrot.slane %v836_v0, %v3524_v47  ;;  %v3521_v3 = vrot.slane %v836_v0, %v3520_v1  ;;  %p5893_p7 = pneg %p5892_p5 }
 0x228   : > { %3827 = vmatprep.subr.bf16.mxu0 %v5754_v4  ;;  %4155 = vmatprep.subr.bf16.mxu1 %v5757_v5  ;;  %v3529_v4 = vrot.slane %v836_v0, %v3528_v2 }
 0x229   : > { %p5900_p0 = pnand %p5899_p11, %p5893_p7 }
 0x22b   : > { %3828 = vmatpush1.bf16.msra.mxu0 %v5752_v6  ;;  %4156 = vmatpush1.bf16.msra.mxu1 %v5755_v7  ;;  %v4198_v6 = vld [vmem:[%s314_s26] sm:$0xf] }
 0x22c   : > { %3829 = vmatprep.subr.bf16.mxu0 %v5760_v8  ;;  %4157 = vmatprep.subr.bf16.mxu1 %v5763_v9 }
 0x22f   : > { %3830 = vmatpush1.bf16.msra.mxu0 %v5758_v10  ;;  %4158 = vmatpush1.bf16.msra.mxu1 %v5761_v11 }
 0x230   : > { %3831 = vmatprep.subr.bf16.mxu0 %v5766_v12  ;;  %4159 = vmatprep.subr.bf16.mxu1 %v5769_v14 }
 0x233   : > { %3832 = vmatpush1.bf16.msra.mxu0 %v5764_v15  ;;  %4160 = vmatpush1.bf16.msra.mxu1 %v5767_v17 }
 0x234   : > { %3833 = vmatprep.subr.bf16.mxu0 %v5772_v52  ;;  %4161 = vmatprep.subr.bf16.mxu1 %v5775_v18  ;;  %v4203_v18 = vrot.slane %v4198_v6, %v3516_v63 }
 0x237   : > { %3834 = vmatpush1.bf16.msra.mxu0 %v5770_v19  ;;  %4162 = vmatpush1.bf16.msra.mxu1 %v5773_v20  ;;  %v4211_v20 = vrot.slane %v4198_v6, %v3524_v47 }
 0x238   : > { %3835 = vmatprep.subr.bf16.mxu0 %v5778_v21  ;;  %4163 = vmatprep.subr.bf16.mxu1 %v5781_v22 }
 0x23b   : > { %3836 = vmatpush1.bf16.msra.mxu0 %v5776_v23  ;;  %4164 = vmatpush1.bf16.msra.mxu1 %v5779_v25  ;;  %v4207_v25 = vrot.slane %v4198_v6, %v3520_v1 }
 0x23c   : > { %3837 = vmatprep.subr.bf16.mxu0 %v5784_v27  ;;  %4165 = vmatprep.subr.bf16.mxu1 %v5787_v13  ;;  %v4215_v13 = vrot.slane %v4198_v6, %v3528_v2 }
 0x23f   : > { %3838 = vmatpush1.bf16.msra.mxu0 %v5782_v29  ;;  %4166 = vmatpush1.bf16.msra.mxu1 %v5785_v31  ;;  %v4229_v31 = vrot.slane %v4224_v43, %v3516_v63 }
 0x240   : > { %3839 = vmatprep.subr.bf16.mxu0 %v5790_v32  ;;  %4167 = vmatprep.subr.bf16.mxu1 %v5793_v16  ;;  %v4237_v16 = vrot.slane %v4224_v43, %v3524_v47 }
 0x243   : > { %3840 = vmatpush1.bf16.msra.mxu0 %v5788_v33  ;;  %4168 = vmatpush1.bf16.msra.mxu1 %v5791_v34  ;;  %v4233_v34 = vrot.slane %v4224_v43, %v3520_v1 }
 0x244   : > { %3841 = vmatprep.subr.bf16.mxu0 %v5796_v35  ;;  %4169 = vmatprep.subr.bf16.mxu1 %v5799_v26  ;;  %v4241_v26 = vrot.slane %v4224_v43, %v3528_v2 }
 0x247   : > { %3842 = vmatpush1.bf16.msra.mxu0 %v5794_v36  ;;  %4170 = vmatpush1.bf16.msra.mxu1 %v5797_v37 }
 0x248   : > { %3843 = vmatprep.subr.bf16.mxu0 %v5802_v39  ;;  %4171 = vmatprep.subr.bf16.mxu1 %v5805_v28 }
 0x24b   : > { %3844 = vmatpush1.bf16.msra.mxu0 %v5800_v41  ;;  %4172 = vmatpush1.bf16.msra.mxu1 %v5803_v44 }
 0x24c   : > { %3845 = vmatprep.subr.bf16.mxu0 %v5808_v45  ;;  %4173 = vmatprep.subr.bf16.mxu1 %v5811_v46 }
 0x24f   : > { %3846 = vmatpush1.bf16.msra.mxu0 %v5806_v24  ;;  %4174 = vmatpush1.bf16.msra.mxu1 %v5809_v48 }
 0x250   : > { %3847 = vmatprep.subr.bf16.mxu0 %v5814_v30  ;;  %4175 = vmatprep.subr.bf16.mxu1 %v5817_v50 }
 0x253   : > { %3848 = vmatpush1.bf16.msra.mxu0 %v5812_v51  ;;  %4176 = vmatpush1.bf16.msra.mxu1 %v5815_v53 }
 0x254   : > { %3849 = vmatprep.subr.bf16.mxu0 %v5820_v40  ;;  %4177 = vmatprep.subr.bf16.mxu1 %v5823_v54 }
 0x257   : > { %3850 = vmatpush1.bf16.msra.mxu0 %v5818_v55  ;;  %4178 = vmatpush1.bf16.msra.mxu1 %v5821_v56 }
 0x258   : > { %3851 = vmatprep.subr.bf16.mxu0 %v5826_v42  ;;  %4179 = vmatprep.subr.bf16.mxu1 %v5829_v59 }
 0x25b   : > { %3852 = vmatpush1.bf16.msra.mxu0 %v5824_v60  ;;  %4180 = vmatpush1.bf16.msra.mxu1 %v5827_v61 }
 0x25e   : > { %3854 = vmatmul.mubr.bf16.vlgmr.msra.gmra.mrb[0].mxu0 %v934_v62  ;;  %4182 = vmatmul.mubr.bf16.vlgmr.msra.gmra.mrb[0].mxu1 %v934_v62 }
 0x331   : > { %v3855_v5 = vpop.f32.mrb[0].mxu0  ;;  %v4183_v7 = vpop.f32.mrb[0].mxu1 }
 0x332   : > { %v4945_v8 = vadd.f32 %v3855_v5, %v3517_v58  ;;  %v4947_v9 = vadd.f32 %v4183_v7, %v3525_v57  ;;  %v3857_v10 = vpop.f32.mrb[1].mxu0  ;;  %v4185_v11 = vpop.f32.mrb[1].mxu1 }
 0x333   : > { %v4946_v12 = vadd.f32 %v3857_v10, %v3521_v3  ;;  %v4948_v14 = vadd.f32 %v4185_v11, %v3529_v4  ;;  %v3859_v15 = vpop.f32.mrb[2].mxu0  ;;  %v4187_v17 = vpop.f32.mrb[2].mxu1 }
 0x334   : > { %v4190_v52 = vmax.f32 %v4945_v8, 6.0  ;;  %v4192_v19 = vmax.f32 %v4947_v9, 6.0  ;;  %v3860_v21 = vpop.f32.mrb[3].mxu0  ;;  %v4188_v22 = vpop.f32.mrb[3].mxu1 }
 0x335   : > { %v4191_v23 = vmax.f32 %v4946_v12, 6.0  ;;  %v4193_v27 = vmax.f32 %v4948_v14, 6.0 }
 0x336   : > { %v4194_v29 = vmin.f32 %v4190_v52, 6.0  ;;  %v4196_v32 = vmin.f32 %v4192_v19, 6.0 }
 0x337   : > { %v4195_v33 = vmin.f32 %v4191_v23, 6.0  ;;  %v4197_v35 = vmin.f32 %v4193_v27, 6.0 }
 0x338   : > { %v4220_v36 = vmul.f32 %v4203_v18, %v4194_v29  ;;  %v4222_v37 = vmul.f32 %v4211_v20, %v4196_v32 }
 0x339   : > { %v4221_v39 = vmul.f32 %v4207_v25, %v4195_v33  ;;  %v4223_v28 = vmul.f32 %v4215_v13, %v4197_v35 }
 0x33a   : > { %v4246_v41 = vadd.f32 %v4229_v31, %v4220_v36  ;;  %v4248_v44 = vadd.f32 %v4237_v16, %v4222_v37 }
 0x33b   : > { %v4247_v45 = vadd.f32 %v4233_v34, %v4221_v39  ;;  %v4249_v46 = vadd.f32 %v4241_v26, %v4223_v28 }
 0x33d   : > { %v4254_v24 = vcombine.low %v4246_v41, %v4247_v45  ;;  %v4255_v48 = vcombine.low %v4248_v44, %v4249_v46 }
 0x33f   : > { %v4262_v30 = vrot.slane %v4254_v24, %v6209_v49  ;;  %v4269_v50 = vrot.slane %v4255_v48, %v6209_v49 }
 0x341   : > { %v4270_v51 = vcombine.low %v4262_v30, %v4269_v50 }
 0x343   : > { %v4277_v53 = vrot.slane %v4270_v51, %v6209_v49 }
 0x345   : > { %4283 = vst.msk [vmem:[%s308_s17] sm:$0xf] %vm4281_vm0, %v4277_v53 }
 0x346   : > { %5903 = shalt.err (!%p5900_p0)
}
 0x347   : > { %s5904_s13 = scalar_lea.hbm %s6786_s11, 64  ;;  %s5908_s26 = scalar_lea.hbm %s6835_s5, 128 }
 0x348   : > { %p5905_p4 = scmp.ne.s32.totalorder %s6786_s11, %s5904_s13  ;;  %p5909_p10 = scmp.lt.u32.totalorder %s6786_s11, %s6835_s5 }
 0x349   : > { %p5910_p6 = scmp.lt.u32.totalorder %s5908_s26, %s5904_s13  ;;  %p5912_p2 = scmp.lt.u32.totalorder %s5904_s13, %s6786_s11 }
 0x34a   : > { %p5906_p1 = pnand %p5905_p4, %p6849_p12 }
 0x34b   : > { %p5911_p13 = por %p5910_p6, %p5909_p10 }
 0x34c   : > { %p5907_p3 = pneg %p5906_p1 }
 0x34d   : > { %p5913_p5 = por %p5912_p2, %p5911_p13 }
 0x34f   : > { %p5914_p7 = pnand %p5913_p5, %p5907_p3 }
 0x351   : > { %5917 = shalt.err (!%p5914_p7)
}
 0x352   : > { %5009 = dma.vmem_to_hbm [thread:$0]  (%p6849_p12), %s6788_s15, 64, %s6786_s11, %s4285_s22  }
 0x353 PF: > { %s4311_s14 = sand.u32 1, %s5948_s18   ;;  %p6850_p8 = scmp.ne.s32.totalorder %s6842_s6, 0 }
 0x354   : > { %p6851_p9 = scmp.ge.s32.totalorder %s5960_s21, 2  ;;  %s4312_s16 = scalar_lea.sflag [#allocation4], %s4311_s14 }
 0x356   : > { %p5019_p11 = pnand %p6851_p9, %p6850_p8 }
 0x358   : > { %5943 = dma.done.wait (!%p5019_p11), %s4312_s16, 64  }
 0x359   : > { %5945 = vsyncadd (!%p5019_p11), %s4312_s16, 4294967232  ;;  %p21_p0 = scmp.ge.s32.totalorder %s6024_s24, 4   ;;  %s6852_s18 = smov %s5952_s19 }
 0x35a   : > { %s6853_s19 = smov %s5956_s20  ;;  %s6854_s20 = smov %s6036_s27 }
 0x35b   : > { %s6855_s21 = smov %s6024_s24  ;;  %23 = sbr.rel (!%p21_p0) target bundleno = 9 (0x9), region = 104 }
 0x362   :  { %4317 = vsyncpa [#allocation3], 1 }
 0x363   :  { %4319 = vsyncpa [#allocation3 + $0x1], 1 }
 0x364   :  { %4320 = vsyncpa [#allocation6], 1 }
 0x365   :  { %4322 = vsyncpa [#allocation6 + $0x1], 1 }
 0x366   :  { %4323 = vsyncpa [#allocation4], 1 }
 0x367   :  { %4325 = vsyncpa [#allocation4 + $0x1], 1 }

</bundles_post_ra>
